<compile_context>
chip_gen: v6e
topology: v6e:2x2x1
jax: 0.10.0
libtpu: 0.0.40
codegen_flags: <defaults>
</compile_context>

<pallas_src>
import functools

import jax
import jax.numpy as jnp
from jax.experimental import pallas as pl
from jax.experimental.pallas import tpu as pltpu


# ----------------------------- helpers -------------------------------------

def _pick_tile(dim, target, quantum):
    """Largest multiple of `quantum` that divides `dim` and is <= `target`;
    falls back to the full dim (full-extent blocks are always legal)."""
    if dim <= target:
        return dim
    start = max((target // quantum) * quantum, quantum)
    for cand in range(start, 0, -quantum):
        if dim % cand == 0:
            return cand
    return dim


@functools.lru_cache(maxsize=1)
def _vmem_limit_bytes():
    """Per-generation scoped VMEM limit: ~96 MiB on v5e/v6e (128 MiB phys),
    ~48 MiB on v7x (64 MiB phys); conservative 32 MiB if the query fails."""
    cap = None
    try:
        cap = getattr(pltpu.get_tpu_info(), "vmem_capacity_bytes", None)
    except Exception:
        cap = None
    if not cap:
        return 32 * 1024 * 1024
    return int(min(100 * 1024 * 1024, max(32 * 1024 * 1024, (cap * 3) // 4)))


def _pick_attention_q_tile(N, H, C, vmem_limit, quantum=16, target=256):
    """Pick a q-row tile so the per-step attention working set fits VMEM."""
    def step_bytes(tq):
        b_kv = 2 * (N * 3 * C * 2)          # resident qkv slab (bf16, dbl buf)
        b_q = 2 * (tq * 3 * C * 2)          # q-row block
        b_attn = 2 * (H * tq * N * 4)       # f32 attn output block (dbl buf)
        b_o = 2 * (tq * C * 2)              # bf16 o output block
        b_tmp = 6 * (tq * N * 4)            # f32 scores/exp/prob temporaries
        return b_kv + b_q + b_attn + b_o + b_tmp

    budget = int(vmem_limit * 0.6)
    cands = sorted({N} | {t for t in range(quantum, N, quantum) if N % t == 0},
                   reverse=True)
    for t in cands:
        if t <= target and step_bytes(t) <= budget:
            return t
    return min(cands)


# ----------------------------- matmul kernels ------------------------------

def _matmul_kernel(x_ref, w_ref, o_ref):
    # Single-K-block variant: no accumulator scratch, one write per (i, j).
    o_ref[...] = jnp.dot(x_ref[...], w_ref[...],
                         preferred_element_type=jnp.float32).astype(o_ref.dtype)


def _matmul_bias_kernel(x_ref, w_ref, b_ref, o_ref):
    acc = jnp.dot(x_ref[...], w_ref[...], preferred_element_type=jnp.float32)
    o_ref[...] = (acc + b_ref[...].astype(jnp.float32)).astype(o_ref.dtype)


def _matmul_kernel_acc(x_ref, w_ref, o_ref, acc_ref):
    # grid = (M//tm, O//tn, K//tk); reduction axis (k) last; f32 acc resident.
    @pl.when(pl.program_id(2) == 0)
    def _():
        acc_ref[...] = jnp.zeros_like(acc_ref)

    acc_ref[...] += jnp.dot(x_ref[...], w_ref[...],
                            preferred_element_type=jnp.float32)

    @pl.when(pl.program_id(2) == pl.num_programs(2) - 1)
    def _():
        o_ref[...] = acc_ref[...].astype(o_ref.dtype)


def _matmul_bias_kernel_acc(x_ref, w_ref, b_ref, o_ref, acc_ref):
    @pl.when(pl.program_id(2) == 0)
    def _():
        acc_ref[...] = jnp.zeros_like(acc_ref)

    acc_ref[...] += jnp.dot(x_ref[...], w_ref[...],
                            preferred_element_type=jnp.float32)

    @pl.when(pl.program_id(2) == pl.num_programs(2) - 1)
    def _():
        o_ref[...] = (acc_ref[...] + b_ref[...].astype(jnp.float32)
                      ).astype(o_ref.dtype)


# ----------------------------- attention kernel ----------------------------

def _attention_kernel(qr_ref, kv_ref, o_ref, attn_ref, *,
                      num_heads, head_dim, scale):
    """qr_ref: (1, tq, 3C) q rows; kv_ref: (1, N, 3C) full (resident) slab.
    o_ref: (1, tq, C) lane-dense per-head concat; attn_ref: (1, H, tq, N) f32."""
    C = num_heads * head_dim
    for h in range(num_heads):                       # static -> static slices
        q = qr_ref[0, :, h * head_dim:(h + 1) * head_dim]            # (tq, hd)
        k = kv_ref[0, :, C + h * head_dim:C + (h + 1) * head_dim]    # (N, hd)
        v = kv_ref[0, :, 2 * C + h * head_dim:2 * C + (h + 1) * head_dim]

        # Fold the softmax scale into q (tq*hd mults, not tq*N); bf16 into MXU.
        qs = (q.astype(jnp.float32) * scale).astype(q.dtype)
        # scores: contract the last dims directly (no k transpose copy).
        s = jnp.einsum("qd,kd->qk", qs, k,
                       preferred_element_type=jnp.float32)           # (tq, N)
        # softmax(s - max(s)) entirely in f32 (matches autocast-off PyTorch).
        s = s - jnp.max(s, axis=-1, keepdims=True)
        e = jnp.exp(s)
        p = e * pl.reciprocal(jnp.sum(e, axis=-1, keepdims=True), approx=False)

        attn_ref[0, h, :, :] = p                                      # f32 out
        o = jnp.dot(p.astype(v.dtype), v,
                    preferred_element_type=jnp.float32)               # (tq, hd)
        o_ref[0, :, h * head_dim:(h + 1) * head_dim] = o.astype(o_ref.dtype)


# ----------------------------- wrappers -------------------------------------

def pallas_linear(x2d, w_t, bias=None, *, out_dtype=None, tm=512, tn=512, tk=1024):
    """x2d: (M, K), w_t: (K, O) pre-transposed, bias: (O,) or None -> (M, O)."""
    M, K = x2d.shape
    K2, O = w_t.shape
    assert K == K2
    out_dtype = out_dtype or x2d.dtype

    in_bytes = jnp.dtype(x2d.dtype).itemsize
    m_quant = 16 if in_bytes < 4 else 8          # bf16 sublane tile is 16
    tm = _pick_tile(M, tm, m_quant)
    tn = _pick_tile(O, tn, 128)
    single_k = K <= 2048                          # collapse reduction axis
    tk = K if single_k else _pick_tile(K, tk, 128)

    vmem_limit = _vmem_limit_bytes()
    cost = pl.CostEstimate(
        flops=2 * M * K * O, transcendentals=0,
        bytes_accessed=int(M * K * in_bytes
                           + K * O * jnp.dtype(w_t.dtype).itemsize
                           + M * O * jnp.dtype(out_dtype).itemsize))

    if single_k:
        grid = (M // tm, O // tn)
        x_spec = pl.BlockSpec((tm, K), lambda i, j: (i, 0))
        w_spec = pl.BlockSpec((K, tn), lambda i, j: (0, j))
        o_spec = pl.BlockSpec((tm, tn), lambda i, j: (i, j))
        cparams = pltpu.CompilerParams(
            dimension_semantics=("parallel", "parallel"),
            vmem_limit_bytes=vmem_limit)
        if bias is None:
            return pl.pallas_call(
                _matmul_kernel,
                out_shape=jax.ShapeDtypeStruct((M, O), out_dtype),
                grid_spec=pltpu.PrefetchScalarGridSpec(
                    num_scalar_prefetch=0, grid=grid,
                    in_specs=[x_spec, w_spec], out_specs=o_spec),
                compiler_params=cparams, cost_estimate=cost,
            )(x2d, w_t)
        b_spec = pl.BlockSpec((1, tn), lambda i, j: (0, j))
        return pl.pallas_call(
            _matmul_bias_kernel,
            out_shape=jax.ShapeDtypeStruct((M, O), out_dtype),
            grid_spec=pltpu.PrefetchScalarGridSpec(
                num_scalar_prefetch=0, grid=grid,
                in_specs=[x_spec, w_spec, b_spec], out_specs=o_spec),
            compiler_params=cparams, cost_estimate=cost,
        )(x2d, w_t, bias.reshape(1, O).astype(jnp.float32))

    # K tiled: resident f32 accumulator, reduction axis last.
    grid = (M // tm, O // tn, K // tk)
    x_spec = pl.BlockSpec((tm, tk), lambda i, j, k: (i, k))
    w_spec = pl.BlockSpec((tk, tn), lambda i, j, k: (k, j))
    o_spec = pl.BlockSpec((tm, tn), lambda i, j, k: (i, j))
    cparams = pltpu.CompilerParams(
        dimension_semantics=("parallel", "parallel", "arbitrary"),
        vmem_limit_bytes=vmem_limit)
    scratch = [pltpu.VMEM((tm, tn), jnp.float32)]
    if bias is None:
        return pl.pallas_call(
            _matmul_kernel_acc,
            out_shape=jax.ShapeDtypeStruct((M, O), out_dtype),
            grid_spec=pltpu.PrefetchScalarGridSpec(
                num_scalar_prefetch=0, grid=grid,
                in_specs=[x_spec, w_spec], out_specs=o_spec,
                scratch_shapes=scratch),
            compiler_params=cparams, cost_estimate=cost,
        )(x2d, w_t)
    b_spec = pl.BlockSpec((1, tn), lambda i, j, k: (0, j))
    return pl.pallas_call(
        _matmul_bias_kernel_acc,
        out_shape=jax.ShapeDtypeStruct((M, O), out_dtype),
        grid_spec=pltpu.PrefetchScalarGridSpec(
            num_scalar_prefetch=0, grid=grid,
            in_specs=[x_spec, w_spec, b_spec], out_specs=o_spec,
            scratch_shapes=scratch),
        compiler_params=cparams, cost_estimate=cost,
    )(x2d, w_t, bias.reshape(1, O).astype(jnp.float32))


def pallas_attention_fused(qkv, *, num_heads, head_dim, scale):
    """qkv: (B, N, 3C) -> (out (B, N, C) in qkv.dtype, attn (B, H, N, N) f32)."""
    B, N, C3 = qkv.shape
    C = num_heads * head_dim
    assert C3 == 3 * C

    vmem_limit = _vmem_limit_bytes()
    tq = _pick_attention_q_tile(N, num_heads, C, vmem_limit)
    grid = (B, N // tq)

    kernel = functools.partial(_attention_kernel, num_heads=num_heads,
                               head_dim=head_dim, scale=scale)

    q_rows_spec = pl.BlockSpec((1, tq, 3 * C), lambda b, qi: (b, qi, 0))
    kv_full_spec = pl.BlockSpec((1, N, 3 * C), lambda b, qi: (b, 0, 0))  # resident
    o_spec = pl.BlockSpec((1, tq, C), lambda b, qi: (b, qi, 0))          # lane-dense
    attn_spec = pl.BlockSpec((1, num_heads, tq, N), lambda b, qi: (b, 0, qi, 0))

    it = jnp.dtype(qkv.dtype).itemsize
    cost = pl.CostEstimate(
        flops=4 * B * num_heads * N * N * head_dim + 6 * B * num_heads * N * N,
        transcendentals=B * num_heads * N * N,
        bytes_accessed=int(2 * B * N * 3 * C * it
                           + B * num_heads * N * N * 4 + B * N * C * it))

    out, attn = pl.pallas_call(
        kernel,
        out_shape=(jax.ShapeDtypeStruct((B, N, C), qkv.dtype),
                   jax.ShapeDtypeStruct((B, num_heads, N, N), jnp.float32)),
        grid_spec=pltpu.PrefetchScalarGridSpec(
            num_scalar_prefetch=0, grid=grid,
            in_specs=[q_rows_spec, kv_full_spec],
            out_specs=[o_spec, attn_spec]),
        compiler_params=pltpu.CompilerParams(
            dimension_semantics=("parallel", "parallel"),
            vmem_limit_bytes=vmem_limit),
        cost_estimate=cost,
    )(qkv, qkv)
    return out, attn


def attention_forward(x, params, num_heads):
    """Matches Attention.forward: returns (x_out (B,N,C) f32, attn (B,H,N,N) f32)."""
    B, N, C = x.shape
    H = num_heads
    hd = C // H
    scale = float(hd) ** -0.5

    # bf16 activations into the MXU (weights are pre-cast bf16); f32 accumulate.
    x2d = x.astype(jnp.bfloat16).reshape(B * N, C)

    # qkv projection (qkv_bias=False -> no bias path at all); keep output bf16.
    qkv = pallas_linear(x2d, params["qkv_w_t"],
                        out_dtype=jnp.bfloat16).reshape(B, N, 3 * C)

    # Fused per-head attention straight off the (B, N, 3C) slab — no permutes.
    out, attn = pallas_attention_fused(qkv, num_heads=H, head_dim=hd, scale=scale)
    # attn_drop / proj_drop with p=0.0 are identities.

    # Output projection (with bias) back to f32.
    x_out = pallas_linear(out.reshape(B * N, C), params["proj_w_t"],
                          bias=params["proj_b"],
                          out_dtype=jnp.float32).reshape(B, N, C)
    return x_out, attn


# ----------------------------- reference (pure JAX) -------------------------

def reference_forward(x, qkv_w, proj_w, proj_b, num_heads):
    B, N, C = x.shape
    hd = C // num_heads
    qkv = (x @ qkv_w.T).reshape(B, N, 3, num_heads, hd).transpose(2, 0, 3, 1, 4)
    q, k, v = qkv[0], qkv[1], qkv[2]
    s = jnp.einsum("bhqd,bhkd->bhqk", q, k) * (hd ** -0.5)
    s = s - jnp.max(s, axis=-1, keepdims=True)
    attn = jax.nn.softmax(s, axis=-1)
    out = jnp.einsum("bhqk,bhkd->bhqd", attn, v)
    out = out.transpose(0, 2, 1, 3).reshape(B, N, C)
    return out @ proj_w.T + proj_b, attn


# ----------------------------- main ------------------------------------------

if __name__ == "__main__":
    B, N, C = 2, 8, 32
    num_heads = 8

    key = jax.random.PRNGKey(0)
    k_x, k_qkv, k_proj_w, k_proj_b = jax.random.split(key, 4)

    x = jax.random.normal(k_x, (B, N, C), dtype=jnp.float32)

    # PyTorch Linear stores weight as (out, in); pre-transpose + cast once.
    qkv_w = jax.random.normal(k_qkv, (3 * C, C), dtype=jnp.float32) * 0.02
    proj_w = jax.random.normal(k_proj_w, (C, C), dtype=jnp.float32) * 0.02
    proj_b = jax.random.normal(k_proj_b, (C,), dtype=jnp.float32) * 0.02

    params = {
        "qkv_w_t": jnp.asarray(qkv_w.T, dtype=jnp.bfloat16),    # (C, 3C)
        "proj_w_t": jnp.asarray(proj_w.T, dtype=jnp.bfloat16),  # (C, C)
        "proj_b": proj_b,                                       # f32
    }

    fwd = jax.jit(functools.partial(attention_forward, num_heads=num_heads))
    x_out, attn = fwd(x, params)
    jax.block_until_ready((x_out, attn))

    assert x_out.shape == (B, N, C) and x_out.dtype == jnp.float32
    assert attn.shape == (B, num_heads, N, N) and attn.dtype == jnp.float32

    # Loose-tolerance parity check vs. a pure-JAX f32 reference (bf16 MXU path).
    x_ref, attn_ref = reference_forward(x, qkv_w, proj_w, proj_b, num_heads)
    err_x = float(jnp.max(jnp.abs(x_out - x_ref)))
    err_a = float(jnp.max(jnp.abs(attn - attn_ref)))
    assert err_x < 5e-2 and err_a < 5e-2, (err_x, err_a)

    print("KERNEL_OK")
</pallas_src>

<mosaic_0001>
module attributes {stable_mosaic.version = 11 : i64} {
  func.func @_matmul_kernel(%arg0: i32, %arg1: i32, %arg2: memref<16x32xbf16, #tpu.memory_space<vmem>>, %arg3: memref<32x96xbf16, #tpu.memory_space<vmem>>, %arg4: memref<16x96xbf16, #tpu.memory_space<vmem>>) attributes {dimension_semantics = [#tpu.dimension_semantics<parallel>, #tpu.dimension_semantics<parallel>], iteration_bounds = array<i64: 1, 1>, scalar_prefetch = 0 : i64, scratch_operands = 0 : i64, tpu.core_type = #tpu.core_type<tc>, window_params = [{transform_indices = @transform_0, window_bounds = array<i64: 16, 32>}, {transform_indices = @transform_1, window_bounds = array<i64: 32, 96>}, {transform_indices = @transform_2, window_bounds = array<i64: 16, 96>}]} {
    %c0 = arith.constant 0 : index
    %c0_0 = arith.constant 0 : index
    %0 = vector.load %arg2[%c0, %c0_0] : memref<16x32xbf16, #tpu.memory_space<vmem>>, vector<16x32xbf16>
    %c0_1 = arith.constant 0 : index
    %c0_2 = arith.constant 0 : index
    %1 = vector.load %arg3[%c0_1, %c0_2] : memref<32x96xbf16, #tpu.memory_space<vmem>>, vector<32x96xbf16>
    %cst = arith.constant dense<0.000000e+00> : vector<16x96xf32>
    %2 = tpu.matmul %0, %1, %cst {dimension_numbers = #tpu.dot_dimension_numbers<[1], [0], [0], [1], [0, 0, 1, 1], [], []>} : vector<16x32xbf16>, vector<32x96xbf16>, vector<16x96xf32> -> vector<16x96xf32>
    %3 = arith.truncf %2 : vector<16x96xf32> to vector<16x96xbf16>
    %c0_3 = arith.constant 0 : index
    %c0_4 = arith.constant 0 : index
    %4 = vector.load %arg4[%c0_3, %c0_4] : memref<16x96xbf16, #tpu.memory_space<vmem>>, vector<16x96xbf16>
    tpu.vector_store %arg4[%c0_3, %c0_4], %3 {strides = array<i32>} : memref<16x96xbf16, #tpu.memory_space<vmem>>, vector<16x96xbf16>,
    return
  }
  func.func @transform_0(%arg0: i32, %arg1: i32) -> (i32, i32) {
    %c0_i32 = arith.constant 0 : i32
    %c0_i32_0 = arith.constant 0 : i32
    return %arg0, %c0_i32 : i32, i32
  }
  func.func @transform_1(%arg0: i32, %arg1: i32) -> (i32, i32) {
    %c0_i32 = arith.constant 0 : i32
    %c0_i32_0 = arith.constant 0 : i32
    return %c0_i32, %arg1 : i32, i32
  }
  func.func @transform_2(%arg0: i32, %arg1: i32) -> (i32, i32) {
    %c0_i32 = arith.constant 0 : i32
    return %arg0, %arg1 : i32, i32
  }
}

module attributes {stable_mosaic.version = 11 : i64} {
  func.func @_matmul_bias_kernel(%arg0: i32, %arg1: i32, %arg2: memref<16x32xbf16, #tpu.memory_space<vmem>>, %arg3: memref<32x32xbf16, #tpu.memory_space<vmem>>, %arg4: memref<1x32xf32, #tpu.memory_space<vmem>>, %arg5: memref<16x32xf32, #tpu.memory_space<vmem>>) attributes {dimension_semantics = [#tpu.dimension_semantics<parallel>, #tpu.dimension_semantics<parallel>], iteration_bounds = array<i64: 1, 1>, scalar_prefetch = 0 : i64, scratch_operands = 0 : i64, tpu.core_type = #tpu.core_type<tc>, window_params = [{transform_indices = @transform_0, window_bounds = array<i64: 16, 32>}, {transform_indices = @transform_1, window_bounds = array<i64: 32, 32>}, {transform_indices = @transform_2, window_bounds = array<i64: 1, 32>}, {transform_indices = @transform_3, window_bounds = array<i64: 16, 32>}]} {
    %c0 = arith.constant 0 : index
    %c0_0 = arith.constant 0 : index
    %0 = vector.load %arg2[%c0, %c0_0] : memref<16x32xbf16, #tpu.memory_space<vmem>>, vector<16x32xbf16>
    %c0_1 = arith.constant 0 : index
    %c0_2 = arith.constant 0 : index
    %1 = vector.load %arg3[%c0_1, %c0_2] : memref<32x32xbf16, #tpu.memory_space<vmem>>, vector<32x32xbf16>
    %cst = arith.constant dense<0.000000e+00> : vector<16x32xf32>
    %2 = tpu.matmul %0, %1, %cst {dimension_numbers = #tpu.dot_dimension_numbers<[1], [0], [0], [1], [0, 0, 1, 1], [], []>} : vector<16x32xbf16>, vector<32x32xbf16>, vector<16x32xf32> -> vector<16x32xf32>
    %c0_3 = arith.constant 0 : index
    %c0_4 = arith.constant 0 : index
    %3 = vector.load %arg4[%c0_3, %c0_4] : memref<1x32xf32, #tpu.memory_space<vmem>>, vector<1x32xf32>
    %4 = vector.broadcast %3 : vector<1x32xf32> to vector<16x32xf32>
    %5 = arith.addf %2, %4 : vector<16x32xf32>
    %c0_5 = arith.constant 0 : index
    %c0_6 = arith.constant 0 : index
    %6 = vector.load %arg5[%c0_5, %c0_6] : memref<16x32xf32, #tpu.memory_space<vmem>>, vector<16x32xf32>
    tpu.vector_store %arg5[%c0_5, %c0_6], %5 {strides = array<i32>} : memref<16x32xf32, #tpu.memory_space<vmem>>, vector<16x32xf32>,
    return
  }
  func.func @transform_0(%arg0: i32, %arg1: i32) -> (i32, i32) {
    %c0_i32 = arith.constant 0 : i32
    %c0_i32_0 = arith.constant 0 : i32
    return %arg0, %c0_i32 : i32, i32
  }
  func.func @transform_1(%arg0: i32, %arg1: i32) -> (i32, i32) {
    %c0_i32 = arith.constant 0 : i32
    %c0_i32_0 = arith.constant 0 : i32
    return %c0_i32, %arg1 : i32, i32
  }
  func.func @transform_2(%arg0: i32, %arg1: i32) -> (i32, i32) {
    %c0_i32 = arith.constant 0 : i32
    %c0_i32_0 = arith.constant 0 : i32
    return %c0_i32, %arg1 : i32, i32
  }
  func.func @transform_3(%arg0: i32, %arg1: i32) -> (i32, i32) {
    %c0_i32 = arith.constant 0 : i32
    return %arg0, %arg1 : i32, i32
  }
}

module attributes {stable_mosaic.version = 11 : i64} {
  func.func @_attention_kernel(%arg0: i32, %arg1: i32, %arg2: memref<1x8x96xbf16, #tpu.memory_space<vmem>>, %arg3: memref<1x8x96xbf16, #tpu.memory_space<vmem>>, %arg4: memref<1x8x32xbf16, #tpu.memory_space<vmem>>, %arg5: memref<1x8x8x8xf32, #tpu.memory_space<vmem>>) attributes {dimension_semantics = [#tpu.dimension_semantics<parallel>, #tpu.dimension_semantics<parallel>], iteration_bounds = array<i64: 2, 1>, scalar_prefetch = 0 : i64, scratch_operands = 0 : i64, tpu.core_type = #tpu.core_type<tc>, window_params = [{transform_indices = @transform_0, window_bounds = array<i64: 1, 8, 96>}, {transform_indices = @transform_1, window_bounds = array<i64: 1, 8, 96>}, {transform_indices = @transform_2, window_bounds = array<i64: 1, 8, 32>}, {transform_indices = @transform_3, window_bounds = array<i64: 1, 8, 8, 8>}]} {
    %c0 = arith.constant 0 : index
    %c0_0 = arith.constant 0 : index
    %c0_1 = arith.constant 0 : index
    %0 = vector.load %arg2[%c0, %c0_0, %c0_1] : memref<1x8x96xbf16, #tpu.memory_space<vmem>>, vector<1x8x4xbf16>
    %1 = vector.shape_cast %0 : vector<1x8x4xbf16> to vector<8x4xbf16>
    %c0_2 = arith.constant 0 : index
    %c0_3 = arith.constant 0 : index
    %c32 = arith.constant 32 : index
    %2 = vector.load %arg3[%c0_2, %c0_3, %c32] : memref<1x8x96xbf16, #tpu.memory_space<vmem>>, vector<1x8x4xbf16>
    %3 = vector.shape_cast %2 : vector<1x8x4xbf16> to vector<8x4xbf16>
    %c0_4 = arith.constant 0 : index
    %c0_5 = arith.constant 0 : index
    %c64 = arith.constant 64 : index
    %4 = vector.load %arg3[%c0_4, %c0_5, %c64] : memref<1x8x96xbf16, #tpu.memory_space<vmem>>, vector<1x8x4xbf16>
    %5 = vector.shape_cast %4 : vector<1x8x4xbf16> to vector<8x4xbf16>
    %6 = arith.extf %1 : vector<8x4xbf16> to vector<8x4xf32>
    %cst = arith.constant 5.000000e-01 : f32
    %7 = vector.broadcast %cst : f32 to vector<8x4xf32>
    %8 = arith.mulf %6, %7 : vector<8x4xf32>
    %9 = arith.truncf %8 : vector<8x4xf32> to vector<8x4xbf16>
    "tpu.trace_start"() <{level = 10 : i32, message = "qd,kd->qk"}> : () -> ()
    %cst_6 = arith.constant dense<0.000000e+00> : vector<8x8xf32>
    %10 = tpu.matmul %9, %3, %cst_6 {dimension_numbers = #tpu.dot_dimension_numbers<[1], [1], [0], [0], [0, 0, 1, 0], [], []>} : vector<8x4xbf16>, vector<8x4xbf16>, vector<8x8xf32> -> vector<8x8xf32>
    "tpu.trace_stop"() : () -> ()
    %cst_7 = arith.constant dense<0xFF800000> : vector<8xf32>
    %11 = vector.multi_reduction <maximumf>, %10, %cst_7 [1] : vector<8x8xf32> to vector<8xf32>
    %12 = vector.shape_cast %11 : vector<8xf32> to vector<8x1xf32>
    %13 = vector.broadcast %12 : vector<8x1xf32> to vector<8x8xf32>
    %14 = arith.subf %10, %13 : vector<8x8xf32>
    %15 = math.exp %14 : vector<8x8xf32>
    %cst_8 = arith.constant dense<0.000000e+00> : vector<8xf32>
    %16 = vector.multi_reduction <add>, %15, %cst_8 [1] : vector<8x8xf32> to vector<8xf32>
    %17 = vector.shape_cast %16 : vector<8xf32> to vector<8x1xf32>
    %18 = tpu.reciprocal %17 : vector<8x1xf32> -> vector<8x1xf32>
    %19 = vector.broadcast %18 : vector<8x1xf32> to vector<8x8xf32>
    %20 = arith.mulf %15, %19 : vector<8x8xf32>
    %c0_9 = arith.constant 0 : index
    %c0_10 = arith.constant 0 : index
    %c0_11 = arith.constant 0 : index
    %c0_12 = arith.constant 0 : index
    %21 = vector.load %arg5[%c0_9, %c0_10, %c0_11, %c0_12] : memref<1x8x8x8xf32, #tpu.memory_space<vmem>>, vector<1x1x8x8xf32>
    %22 = vector.shape_cast %21 : vector<1x1x8x8xf32> to vector<8x8xf32>
    %23 = vector.shape_cast %20 : vector<8x8xf32> to vector<1x1x8x8xf32>
    tpu.vector_store %arg5[%c0_9, %c0_10, %c0_11, %c0_12], %23 {strides = array<i32>} : memref<1x8x8x8xf32, #tpu.memory_space<vmem>>, vector<1x1x8x8xf32>,
    %24 = arith.truncf %20 : vector<8x8xf32> to vector<8x8xbf16>
    %cst_13 = arith.constant dense<0.000000e+00> : vector<8x4xf32>
    %25 = tpu.matmul %24, %5, %cst_13 {dimension_numbers = #tpu.dot_dimension_numbers<[1], [0], [0], [1], [0, 0, 1, 1], [], []>} : vector<8x8xbf16>, vector<8x4xbf16>, vector<8x4xf32> -> vector<8x4xf32>
    %26 = arith.truncf %25 : vector<8x4xf32> to vector<8x4xbf16>
    %c0_14 = arith.constant 0 : index
    %c0_15 = arith.constant 0 : index
    %c0_16 = arith.constant 0 : index
    %27 = vector.load %arg4[%c0_14, %c0_15, %c0_16] : memref<1x8x32xbf16, #tpu.memory_space<vmem>>, vector<1x8x4xbf16>
    %28 = vector.shape_cast %27 : vector<1x8x4xbf16> to vector<8x4xbf16>
    %29 = vector.shape_cast %26 : vector<8x4xbf16> to vector<1x8x4xbf16>
    tpu.vector_store %arg4[%c0_14, %c0_15, %c0_16], %29 {strides = array<i32>} : memref<1x8x32xbf16, #tpu.memory_space<vmem>>, vector<1x8x4xbf16>,
    %c0_17 = arith.constant 0 : index
    %c0_18 = arith.constant 0 : index
    %c4 = arith.constant 4 : index
    %30 = vector.load %arg2[%c0_17, %c0_18, %c4] : memref<1x8x96xbf16, #tpu.memory_space<vmem>>, vector<1x8x4xbf16>
    %31 = vector.shape_cast %30 : vector<1x8x4xbf16> to vector<8x4xbf16>
    %c0_19 = arith.constant 0 : index
    %c0_20 = arith.constant 0 : index
    %c36 = arith.constant 36 : index
    %32 = vector.load %arg3[%c0_19, %c0_20, %c36] : memref<1x8x96xbf16, #tpu.memory_space<vmem>>, vector<1x8x4xbf16>
    %33 = vector.shape_cast %32 : vector<1x8x4xbf16> to vector<8x4xbf16>
    %c0_21 = arith.constant 0 : index
    %c0_22 = arith.constant 0 : index
    %c68 = arith.constant 68 : index
    %34 = vector.load %arg3[%c0_21, %c0_22, %c68] : memref<1x8x96xbf16, #tpu.memory_space<vmem>>, vector<1x8x4xbf16>
    %35 = vector.shape_cast %34 : vector<1x8x4xbf16> to vector<8x4xbf16>
    %36 = arith.extf %31 : vector<8x4xbf16> to vector<8x4xf32>
    %cst_23 = arith.constant 5.000000e-01 : f32
    %37 = vector.broadcast %cst_23 : f32 to vector<8x4xf32>
    %38 = arith.mulf %36, %37 : vector<8x4xf32>
    %39 = arith.truncf %38 : vector<8x4xf32> to vector<8x4xbf16>
    "tpu.trace_start"() <{level = 10 : i32, message = "qd,kd->qk"}> : () -> ()
    %cst_24 = arith.constant dense<0.000000e+00> : vector<8x8xf32>
    %40 = tpu.matmul %39, %33, %cst_24 {dimension_numbers = #tpu.dot_dimension_numbers<[1], [1], [0], [0], [0, 0, 1, 0], [], []>} : vector<8x4xbf16>, vector<8x4xbf16>, vector<8x8xf32> -> vector<8x8xf32>
    "tpu.trace_stop"() : () -> ()
    %cst_25 = arith.constant dense<0xFF800000> : vector<8xf32>
    %41 = vector.multi_reduction <maximumf>, %40, %cst_25 [1] : vector<8x8xf32> to vector<8xf32>
    %42 = vector.shape_cast %41 : vector<8xf32> to vector<8x1xf32>
    %43 = vector.broadcast %42 : vector<8x1xf32> to vector<8x8xf32>
    %44 = arith.subf %40, %43 : vector<8x8xf32>
    %45 = math.exp %44 : vector<8x8xf32>
    %cst_26 = arith.constant dense<0.000000e+00> : vector<8xf32>
    %46 = vector.multi_reduction <add>, %45, %cst_26 [1] : vector<8x8xf32> to vector<8xf32>
    %47 = vector.shape_cast %46 : vector<8xf32> to vector<8x1xf32>
    %48 = tpu.reciprocal %47 : vector<8x1xf32> -> vector<8x1xf32>
    %49 = vector.broadcast %48 : vector<8x1xf32> to vector<8x8xf32>
    %50 = arith.mulf %45, %49 : vector<8x8xf32>
    %c0_27 = arith.constant 0 : index
    %c1 = arith.constant 1 : index
    %c0_28 = arith.constant 0 : index
    %c0_29 = arith.constant 0 : index
    %51 = vector.load %arg5[%c0_27, %c1, %c0_28, %c0_29] : memref<1x8x8x8xf32, #tpu.memory_space<vmem>>, vector<1x1x8x8xf32>
    %52 = vector.shape_cast %51 : vector<1x1x8x8xf32> to vector<8x8xf32>
    %53 = vector.shape_cast %50 : vector<8x8xf32> to vector<1x1x8x8xf32>
    tpu.vector_store %arg5[%c0_27, %c1, %c0_28, %c0_29], %53 {strides = array<i32>} : memref<1x8x8x8xf32, #tpu.memory_space<vmem>>, vector<1x1x8x8xf32>,
    %54 = arith.truncf %50 : vector<8x8xf32> to vector<8x8xbf16>
    %cst_30 = arith.constant dense<0.000000e+00> : vector<8x4xf32>
    %55 = tpu.matmul %54, %35, %cst_30 {dimension_numbers = #tpu.dot_dimension_numbers<[1], [0], [0], [1], [0, 0, 1, 1], [], []>} : vector<8x8xbf16>, vector<8x4xbf16>, vector<8x4xf32> -> vector<8x4xf32>
    %56 = arith.truncf %55 : vector<8x4xf32> to vector<8x4xbf16>
    %c0_31 = arith.constant 0 : index
    %c0_32 = arith.constant 0 : index
    %c4_33 = arith.constant 4 : index
    %57 = vector.load %arg4[%c0_31, %c0_32, %c4_33] : memref<1x8x32xbf16, #tpu.memory_space<vmem>>, vector<1x8x4xbf16>
    %58 = vector.shape_cast %57 : vector<1x8x4xbf16> to vector<8x4xbf16>
    %59 = vector.shape_cast %56 : vector<8x4xbf16> to vector<1x8x4xbf16>
    tpu.vector_store %arg4[%c0_31, %c0_32, %c4_33], %59 {strides = array<i32>} : memref<1x8x32xbf16, #tpu.memory_space<vmem>>, vector<1x8x4xbf16>,
    %c0_34 = arith.constant 0 : index
    %c0_35 = arith.constant 0 : index
    %c8 = arith.constant 8 : index
    %60 = vector.load %arg2[%c0_34, %c0_35, %c8] : memref<1x8x96xbf16, #tpu.memory_space<vmem>>, vector<1x8x4xbf16>
    %61 = vector.shape_cast %60 : vector<1x8x4xbf16> to vector<8x4xbf16>
    %c0_36 = arith.constant 0 : index
    %c0_37 = arith.constant 0 : index
    %c40 = arith.constant 40 : index
    %62 = vector.load %arg3[%c0_36, %c0_37, %c40] : memref<1x8x96xbf16, #tpu.memory_space<vmem>>, vector<1x8x4xbf16>
    %63 = vector.shape_cast %62 : vector<1x8x4xbf16> to vector<8x4xbf16>
    %c0_38 = arith.constant 0 : index
    %c0_39 = arith.constant 0 : index
    %c72 = arith.constant 72 : index
    %64 = vector.load %arg3[%c0_38, %c0_39, %c72] : memref<1x8x96xbf16, #tpu.memory_space<vmem>>, vector<1x8x4xbf16>
    %65 = vector.shape_cast %64 : vector<1x8x4xbf16> to vector<8x4xbf16>
    %66 = arith.extf %61 : vector<8x4xbf16> to vector<8x4xf32>
    %cst_40 = arith.constant 5.000000e-01 : f32
    %67 = vector.broadcast %cst_40 : f32 to vector<8x4xf32>
    %68 = arith.mulf %66, %67 : vector<8x4xf32>
    %69 = arith.truncf %68 : vector<8x4xf32> to vector<8x4xbf16>
    "tpu.trace_start"() <{level = 10 : i32, message = "qd,kd->qk"}> : () -> ()
    %cst_41 = arith.constant dense<0.000000e+00> : vector<8x8xf32>
    %70 = tpu.matmul %69, %63, %cst_41 {dimension_numbers = #tpu.dot_dimension_numbers<[1], [1], [0], [0], [0, 0, 1, 0], [], []>} : vector<8x4xbf16>, vector<8x4xbf16>, vector<8x8xf32> -> vector<8x8xf32>
    "tpu.trace_stop"() : () -> ()
    %cst_42 = arith.constant dense<0xFF800000> : vector<8xf32>
    %71 = vector.multi_reduction <maximumf>, %70, %cst_42 [1] : vector<8x8xf32> to vector<8xf32>
    %72 = vector.shape_cast %71 : vector<8xf32> to vector<8x1xf32>
    %73 = vector.broadcast %72 : vector<8x1xf32> to vector<8x8xf32>
    %74 = arith.subf %70, %73 : vector<8x8xf32>
    %75 = math.exp %74 : vector<8x8xf32>
    %cst_43 = arith.constant dense<0.000000e+00> : vector<8xf32>
    %76 = vector.multi_reduction <add>, %75, %cst_43 [1] : vector<8x8xf32> to vector<8xf32>
    %77 = vector.shape_cast %76 : vector<8xf32> to vector<8x1xf32>
    %78 = tpu.reciprocal %77 : vector<8x1xf32> -> vector<8x1xf32>
    %79 = vector.broadcast %78 : vector<8x1xf32> to vector<8x8xf32>
    %80 = arith.mulf %75, %79 : vector<8x8xf32>
    %c0_44 = arith.constant 0 : index
    %c2 = arith.constant 2 : index
    %c0_45 = arith.constant 0 : index
    %c0_46 = arith.constant 0 : index
    %81 = vector.load %arg5[%c0_44, %c2, %c0_45, %c0_46] : memref<1x8x8x8xf32, #tpu.memory_space<vmem>>, vector<1x1x8x8xf32>
    %82 = vector.shape_cast %81 : vector<1x1x8x8xf32> to vector<8x8xf32>
    %83 = vector.shape_cast %80 : vector<8x8xf32> to vector<1x1x8x8xf32>
    tpu.vector_store %arg5[%c0_44, %c2, %c0_45, %c0_46], %83 {strides = array<i32>} : memref<1x8x8x8xf32, #tpu.memory_space<vmem>>, vector<1x1x8x8xf32>,
    %84 = arith.truncf %80 : vector<8x8xf32> to vector<8x8xbf16>
    %cst_47 = arith.constant dense<0.000000e+00> : vector<8x4xf32>
    %85 = tpu.matmul %84, %65, %cst_47 {dimension_numbers = #tpu.dot_dimension_numbers<[1], [0], [0], [1], [0, 0, 1, 1], [], []>} : vector<8x8xbf16>, vector<8x4xbf16>, vector<8x4xf32> -> vector<8x4xf32>
    %86 = arith.truncf %85 : vector<8x4xf32> to vector<8x4xbf16>
    %c0_48 = arith.constant 0 : index
    %c0_49 = arith.constant 0 : index
    %c8_50 = arith.constant 8 : index
    %87 = vector.load %arg4[%c0_48, %c0_49, %c8_50] : memref<1x8x32xbf16, #tpu.memory_space<vmem>>, vector<1x8x4xbf16>
    %88 = vector.shape_cast %87 : vector<1x8x4xbf16> to vector<8x4xbf16>
    %89 = vector.shape_cast %86 : vector<8x4xbf16> to vector<1x8x4xbf16>
    tpu.vector_store %arg4[%c0_48, %c0_49, %c8_50], %89 {strides = array<i32>} : memref<1x8x32xbf16, #tpu.memory_space<vmem>>, vector<1x8x4xbf16>,
    %c0_51 = arith.constant 0 : index
    %c0_52 = arith.constant 0 : index
    %c12 = arith.constant 12 : index
    %90 = vector.load %arg2[%c0_51, %c0_52, %c12] : memref<1x8x96xbf16, #tpu.memory_space<vmem>>, vector<1x8x4xbf16>
    %91 = vector.shape_cast %90 : vector<1x8x4xbf16> to vector<8x4xbf16>
    %c0_53 = arith.constant 0 : index
    %c0_54 = arith.constant 0 : index
    %c44 = arith.constant 44 : index
    %92 = vector.load %arg3[%c0_53, %c0_54, %c44] : memref<1x8x96xbf16, #tpu.memory_space<vmem>>, vector<1x8x4xbf16>
    %93 = vector.shape_cast %92 : vector<1x8x4xbf16> to vector<8x4xbf16>
    %c0_55 = arith.constant 0 : index
    %c0_56 = arith.constant 0 : index
    %c76 = arith.constant 76 : index
    %94 = vector.load %arg3[%c0_55, %c0_56, %c76] : memref<1x8x96xbf16, #tpu.memory_space<vmem>>, vector<1x8x4xbf16>
    %95 = vector.shape_cast %94 : vector<1x8x4xbf16> to vector<8x4xbf16>
    %96 = arith.extf %91 : vector<8x4xbf16> to vector<8x4xf32>
    %cst_57 = arith.constant 5.000000e-01 : f32
    %97 = vector.broadcast %cst_57 : f32 to vector<8x4xf32>
    %98 = arith.mulf %96, %97 : vector<8x4xf32>
    %99 = arith.truncf %98 : vector<8x4xf32> to vector<8x4xbf16>
    "tpu.trace_start"() <{level = 10 : i32, message = "qd,kd->qk"}> : () -> ()
    %cst_58 = arith.constant dense<0.000000e+00> : vector<8x8xf32>
    %100 = tpu.matmul %99, %93, %cst_58 {dimension_numbers = #tpu.dot_dimension_numbers<[1], [1], [0], [0], [0, 0, 1, 0], [], []>} : vector<8x4xbf16>, vector<8x4xbf16>, vector<8x8xf32> -> vector<8x8xf32>
    "tpu.trace_stop"() : () -> ()
    %cst_59 = arith.constant dense<0xFF800000> : vector<8xf32>
    %101 = vector.multi_reduction <maximumf>, %100, %cst_59 [1] : vector<8x8xf32> to vector<8xf32>
    %102 = vector.shape_cast %101 : vector<8xf32> to vector<8x1xf32>
    %103 = vector.broadcast %102 : vector<8x1xf32> to vector<8x8xf32>
    %104 = arith.subf %100, %103 : vector<8x8xf32>
    %105 = math.exp %104 : vector<8x8xf32>
    %cst_60 = arith.constant dense<0.000000e+00> : vector<8xf32>
    %106 = vector.multi_reduction <add>, %105, %cst_60 [1] : vector<8x8xf32> to vector<8xf32>
    %107 = vector.shape_cast %106 : vector<8xf32> to vector<8x1xf32>
    %108 = tpu.reciprocal %107 : vector<8x1xf32> -> vector<8x1xf32>
    %109 = vector.broadcast %108 : vector<8x1xf32> to vector<8x8xf32>
    %110 = arith.mulf %105, %109 : vector<8x8xf32>
    %c0_61 = arith.constant 0 : index
    %c3 = arith.constant 3 : index
    %c0_62 = arith.constant 0 : index
    %c0_63 = arith.constant 0 : index
    %111 = vector.load %arg5[%c0_61, %c3, %c0_62, %c0_63] : memref<1x8x8x8xf32, #tpu.memory_space<vmem>>, vector<1x1x8x8xf32>
    %112 = vector.shape_cast %111 : vector<1x1x8x8xf32> to vector<8x8xf32>
    %113 = vector.shape_cast %110 : vector<8x8xf32> to vector<1x1x8x8xf32>
    tpu.vector_store %arg5[%c0_61, %c3, %c0_62, %c0_63], %113 {strides = array<i32>} : memref<1x8x8x8xf32, #tpu.memory_space<vmem>>, vector<1x1x8x8xf32>,
    %114 = arith.truncf %110 : vector<8x8xf32> to vector<8x8xbf16>
    %cst_64 = arith.constant dense<0.000000e+00> : vector<8x4xf32>
    %115 = tpu.matmul %114, %95, %cst_64 {dimension_numbers = #tpu.dot_dimension_numbers<[1], [0], [0], [1], [0, 0, 1, 1], [], []>} : vector<8x8xbf16>, vector<8x4xbf16>, vector<8x4xf32> -> vector<8x4xf32>
    %116 = arith.truncf %115 : vector<8x4xf32> to vector<8x4xbf16>
    %c0_65 = arith.constant 0 : index
    %c0_66 = arith.constant 0 : index
    %c12_67 = arith.constant 12 : index
    %117 = vector.load %arg4[%c0_65, %c0_66, %c12_67] : memref<1x8x32xbf16, #tpu.memory_space<vmem>>, vector<1x8x4xbf16>
    %118 = vector.shape_cast %117 : vector<1x8x4xbf16> to vector<8x4xbf16>
    %119 = vector.shape_cast %116 : vector<8x4xbf16> to vector<1x8x4xbf16>
    tpu.vector_store %arg4[%c0_65, %c0_66, %c12_67], %119 {strides = array<i32>} : memref<1x8x32xbf16, #tpu.memory_space<vmem>>, vector<1x8x4xbf16>,
    %c0_68 = arith.constant 0 : index
    %c0_69 = arith.constant 0 : index
    %c16 = arith.constant 16 : index
    %120 = vector.load %arg2[%c0_68, %c0_69, %c16] : memref<1x8x96xbf16, #tpu.memory_space<vmem>>, vector<1x8x4xbf16>
    %121 = vector.shape_cast %120 : vector<1x8x4xbf16> to vector<8x4xbf16>
    %c0_70 = arith.constant 0 : index
    %c0_71 = arith.constant 0 : index
    %c48 = arith.constant 48 : index
    %122 = vector.load %arg3[%c0_70, %c0_71, %c48] : memref<1x8x96xbf16, #tpu.memory_space<vmem>>, vector<1x8x4xbf16>
    %123 = vector.shape_cast %122 : vector<1x8x4xbf16> to vector<8x4xbf16>
    %c0_72 = arith.constant 0 : index
    %c0_73 = arith.constant 0 : index
    %c80 = arith.constant 80 : index
    %124 = vector.load %arg3[%c0_72, %c0_73, %c80] : memref<1x8x96xbf16, #tpu.memory_space<vmem>>, vector<1x8x4xbf16>
    %125 = vector.shape_cast %124 : vector<1x8x4xbf16> to vector<8x4xbf16>
    %126 = arith.extf %121 : vector<8x4xbf16> to vector<8x4xf32>
    %cst_74 = arith.constant 5.000000e-01 : f32
    %127 = vector.broadcast %cst_74 : f32 to vector<8x4xf32>
    %128 = arith.mulf %126, %127 : vector<8x4xf32>
    %129 = arith.truncf %128 : vector<8x4xf32> to vector<8x4xbf16>
    "tpu.trace_start"() <{level = 10 : i32, message = "qd,kd->qk"}> : () -> ()
    %cst_75 = arith.constant dense<0.000000e+00> : vector<8x8xf32>
    %130 = tpu.matmul %129, %123, %cst_75 {dimension_numbers = #tpu.dot_dimension_numbers<[1], [1], [0], [0], [0, 0, 1, 0], [], []>} : vector<8x4xbf16>, vector<8x4xbf16>, vector<8x8xf32> -> vector<8x8xf32>
    "tpu.trace_stop"() : () -> ()
    %cst_76 = arith.constant dense<0xFF800000> : vector<8xf32>
    %131 = vector.multi_reduction <maximumf>, %130, %cst_76 [1] : vector<8x8xf32> to vector<8xf32>
    %132 = vector.shape_cast %131 : vector<8xf32> to vector<8x1xf32>
    %133 = vector.broadcast %132 : vector<8x1xf32> to vector<8x8xf32>
    %134 = arith.subf %130, %133 : vector<8x8xf32>
    %135 = math.exp %134 : vector<8x8xf32>
    %cst_77 = arith.constant dense<0.000000e+00> : vector<8xf32>
    %136 = vector.multi_reduction <add>, %135, %cst_77 [1] : vector<8x8xf32> to vector<8xf32>
    %137 = vector.shape_cast %136 : vector<8xf32> to vector<8x1xf32>
    %138 = tpu.reciprocal %137 : vector<8x1xf32> -> vector<8x1xf32>
    %139 = vector.broadcast %138 : vector<8x1xf32> to vector<8x8xf32>
    %140 = arith.mulf %135, %139 : vector<8x8xf32>
    %c0_78 = arith.constant 0 : index
    %c4_79 = arith.constant 4 : index
    %c0_80 = arith.constant 0 : index
    %c0_81 = arith.constant 0 : index
    %141 = vector.load %arg5[%c0_78, %c4_79, %c0_80, %c0_81] : memref<1x8x8x8xf32, #tpu.memory_space<vmem>>, vector<1x1x8x8xf32>
    %142 = vector.shape_cast %141 : vector<1x1x8x8xf32> to vector<8x8xf32>
    %143 = vector.shape_cast %140 : vector<8x8xf32> to vector<1x1x8x8xf32>
    tpu.vector_store %arg5[%c0_78, %c4_79, %c0_80, %c0_81], %143 {strides = array<i32>} : memref<1x8x8x8xf32, #tpu.memory_space<vmem>>, vector<1x1x8x8xf32>,
    %144 = arith.truncf %140 : vector<8x8xf32> to vector<8x8xbf16>
    %cst_82 = arith.constant dense<0.000000e+00> : vector<8x4xf32>
    %145 = tpu.matmul %144, %125, %cst_82 {dimension_numbers = #tpu.dot_dimension_numbers<[1], [0], [0], [1], [0, 0, 1, 1], [], []>} : vector<8x8xbf16>, vector<8x4xbf16>, vector<8x4xf32> -> vector<8x4xf32>
    %146 = arith.truncf %145 : vector<8x4xf32> to vector<8x4xbf16>
    %c0_83 = arith.constant 0 : index
    %c0_84 = arith.constant 0 : index
    %c16_85 = arith.constant 16 : index
    %147 = vector.load %arg4[%c0_83, %c0_84, %c16_85] : memref<1x8x32xbf16, #tpu.memory_space<vmem>>, vector<1x8x4xbf16>
    %148 = vector.shape_cast %147 : vector<1x8x4xbf16> to vector<8x4xbf16>
    %149 = vector.shape_cast %146 : vector<8x4xbf16> to vector<1x8x4xbf16>
    tpu.vector_store %arg4[%c0_83, %c0_84, %c16_85], %149 {strides = array<i32>} : memref<1x8x32xbf16, #tpu.memory_space<vmem>>, vector<1x8x4xbf16>,
    %c0_86 = arith.constant 0 : index
    %c0_87 = arith.constant 0 : index
    %c20 = arith.constant 20 : index
    %150 = vector.load %arg2[%c0_86, %c0_87, %c20] : memref<1x8x96xbf16, #tpu.memory_space<vmem>>, vector<1x8x4xbf16>
    %151 = vector.shape_cast %150 : vector<1x8x4xbf16> to vector<8x4xbf16>
    %c0_88 = arith.constant 0 : index
    %c0_89 = arith.constant 0 : index
    %c52 = arith.constant 52 : index
    %152 = vector.load %arg3[%c0_88, %c0_89, %c52] : memref<1x8x96xbf16, #tpu.memory_space<vmem>>, vector<1x8x4xbf16>
    %153 = vector.shape_cast %152 : vector<1x8x4xbf16> to vector<8x4xbf16>
    %c0_90 = arith.constant 0 : index
    %c0_91 = arith.constant 0 : index
    %c84 = arith.constant 84 : index
    %154 = vector.load %arg3[%c0_90, %c0_91, %c84] : memref<1x8x96xbf16, #tpu.memory_space<vmem>>, vector<1x8x4xbf16>
    %155 = vector.shape_cast %154 : vector<1x8x4xbf16> to vector<8x4xbf16>
    %156 = arith.extf %151 : vector<8x4xbf16> to vector<8x4xf32>
    %cst_92 = arith.constant 5.000000e-01 : f32
    %157 = vector.broadcast %cst_92 : f32 to vector<8x4xf32>
    %158 = arith.mulf %156, %157 : vector<8x4xf32>
    %159 = arith.truncf %158 : vector<8x4xf32> to vector<8x4xbf16>
    "tpu.trace_start"() <{level = 10 : i32, message = "qd,kd->qk"}> : () -> ()
    %cst_93 = arith.constant dense<0.000000e+00> : vector<8x8xf32>
    %160 = tpu.matmul %159, %153, %cst_93 {dimension_numbers = #tpu.dot_dimension_numbers<[1], [1], [0], [0], [0, 0, 1, 0], [], []>} : vector<8x4xbf16>, vector<8x4xbf16>, vector<8x8xf32> -> vector<8x8xf32>
    "tpu.trace_stop"() : () -> ()
    %cst_94 = arith.constant dense<0xFF800000> : vector<8xf32>
    %161 = vector.multi_reduction <maximumf>, %160, %cst_94 [1] : vector<8x8xf32> to vector<8xf32>
    %162 = vector.shape_cast %161 : vector<8xf32> to vector<8x1xf32>
    %163 = vector.broadcast %162 : vector<8x1xf32> to vector<8x8xf32>
    %164 = arith.subf %160, %163 : vector<8x8xf32>
    %165 = math.exp %164 : vector<8x8xf32>
    %cst_95 = arith.constant dense<0.000000e+00> : vector<8xf32>
    %166 = vector.multi_reduction <add>, %165, %cst_95 [1] : vector<8x8xf32> to vector<8xf32>
    %167 = vector.shape_cast %166 : vector<8xf32> to vector<8x1xf32>
    %168 = tpu.reciprocal %167 : vector<8x1xf32> -> vector<8x1xf32>
    %169 = vector.broadcast %168 : vector<8x1xf32> to vector<8x8xf32>
    %170 = arith.mulf %165, %169 : vector<8x8xf32>
    %c0_96 = arith.constant 0 : index
    %c5 = arith.constant 5 : index
    %c0_97 = arith.constant 0 : index
    %c0_98 = arith.constant 0 : index
    %171 = vector.load %arg5[%c0_96, %c5, %c0_97, %c0_98] : memref<1x8x8x8xf32, #tpu.memory_space<vmem>>, vector<1x1x8x8xf32>
    %172 = vector.shape_cast %171 : vector<1x1x8x8xf32> to vector<8x8xf32>
    %173 = vector.shape_cast %170 : vector<8x8xf32> to vector<1x1x8x8xf32>
    tpu.vector_store %arg5[%c0_96, %c5, %c0_97, %c0_98], %173 {strides = array<i32>} : memref<1x8x8x8xf32, #tpu.memory_space<vmem>>, vector<1x1x8x8xf32>,
    %174 = arith.truncf %170 : vector<8x8xf32> to vector<8x8xbf16>
    %cst_99 = arith.constant dense<0.000000e+00> : vector<8x4xf32>
    %175 = tpu.matmul %174, %155, %cst_99 {dimension_numbers = #tpu.dot_dimension_numbers<[1], [0], [0], [1], [0, 0, 1, 1], [], []>} : vector<8x8xbf16>, vector<8x4xbf16>, vector<8x4xf32> -> vector<8x4xf32>
    %176 = arith.truncf %175 : vector<8x4xf32> to vector<8x4xbf16>
    %c0_100 = arith.constant 0 : index
    %c0_101 = arith.constant 0 : index
    %c20_102 = arith.constant 20 : index
    %177 = vector.load %arg4[%c0_100, %c0_101, %c20_102] : memref<1x8x32xbf16, #tpu.memory_space<vmem>>, vector<1x8x4xbf16>
    %178 = vector.shape_cast %177 : vector<1x8x4xbf16> to vector<8x4xbf16>
    %179 = vector.shape_cast %176 : vector<8x4xbf16> to vector<1x8x4xbf16>
    tpu.vector_store %arg4[%c0_100, %c0_101, %c20_102], %179 {strides = array<i32>} : memref<1x8x32xbf16, #tpu.memory_space<vmem>>, vector<1x8x4xbf16>,
    %c0_103 = arith.constant 0 : index
    %c0_104 = arith.constant 0 : index
    %c24 = arith.constant 24 : index
    %180 = vector.load %arg2[%c0_103, %c0_104, %c24] : memref<1x8x96xbf16, #tpu.memory_space<vmem>>, vector<1x8x4xbf16>
    %181 = vector.shape_cast %180 : vector<1x8x4xbf16> to vector<8x4xbf16>
    %c0_105 = arith.constant 0 : index
    %c0_106 = arith.constant 0 : index
    %c56 = arith.constant 56 : index
    %182 = vector.load %arg3[%c0_105, %c0_106, %c56] : memref<1x8x96xbf16, #tpu.memory_space<vmem>>, vector<1x8x4xbf16>
    %183 = vector.shape_cast %182 : vector<1x8x4xbf16> to vector<8x4xbf16>
    %c0_107 = arith.constant 0 : index
    %c0_108 = arith.constant 0 : index
    %c88 = arith.constant 88 : index
    %184 = vector.load %arg3[%c0_107, %c0_108, %c88] : memref<1x8x96xbf16, #tpu.memory_space<vmem>>, vector<1x8x4xbf16>
    %185 = vector.shape_cast %184 : vector<1x8x4xbf16> to vector<8x4xbf16>
    %186 = arith.extf %181 : vector<8x4xbf16> to vector<8x4xf32>
    %cst_109 = arith.constant 5.000000e-01 : f32
    %187 = vector.broadcast %cst_109 : f32 to vector<8x4xf32>
    %188 = arith.mulf %186, %187 : vector<8x4xf32>
    %189 = arith.truncf %188 : vector<8x4xf32> to vector<8x4xbf16>
    "tpu.trace_start"() <{level = 10 : i32, message = "qd,kd->qk"}> : () -> ()
    %cst_110 = arith.constant dense<0.000000e+00> : vector<8x8xf32>
    %190 = tpu.matmul %189, %183, %cst_110 {dimension_numbers = #tpu.dot_dimension_numbers<[1], [1], [0], [0], [0, 0, 1, 0], [], []>} : vector<8x4xbf16>, vector<8x4xbf16>, vector<8x8xf32> -> vector<8x8xf32>
    "tpu.trace_stop"() : () -> ()
    %cst_111 = arith.constant dense<0xFF800000> : vector<8xf32>
    %191 = vector.multi_reduction <maximumf>, %190, %cst_111 [1] : vector<8x8xf32> to vector<8xf32>
    %192 = vector.shape_cast %191 : vector<8xf32> to vector<8x1xf32>
    %193 = vector.broadcast %192 : vector<8x1xf32> to vector<8x8xf32>
    %194 = arith.subf %190, %193 : vector<8x8xf32>
    %195 = math.exp %194 : vector<8x8xf32>
    %cst_112 = arith.constant dense<0.000000e+00> : vector<8xf32>
    %196 = vector.multi_reduction <add>, %195, %cst_112 [1] : vector<8x8xf32> to vector<8xf32>
    %197 = vector.shape_cast %196 : vector<8xf32> to vector<8x1xf32>
    %198 = tpu.reciprocal %197 : vector<8x1xf32> -> vector<8x1xf32>
    %199 = vector.broadcast %198 : vector<8x1xf32> to vector<8x8xf32>
    %200 = arith.mulf %195, %199 : vector<8x8xf32>
    %c0_113 = arith.constant 0 : index
    %c6 = arith.constant 6 : index
    %c0_114 = arith.constant 0 : index
    %c0_115 = arith.constant 0 : index
    %201 = vector.load %arg5[%c0_113, %c6, %c0_114, %c0_115] : memref<1x8x8x8xf32, #tpu.memory_space<vmem>>, vector<1x1x8x8xf32>
    %202 = vector.shape_cast %201 : vector<1x1x8x8xf32> to vector<8x8xf32>
    %203 = vector.shape_cast %200 : vector<8x8xf32> to vector<1x1x8x8xf32>
    tpu.vector_store %arg5[%c0_113, %c6, %c0_114, %c0_115], %203 {strides = array<i32>} : memref<1x8x8x8xf32, #tpu.memory_space<vmem>>, vector<1x1x8x8xf32>,
    %204 = arith.truncf %200 : vector<8x8xf32> to vector<8x8xbf16>
    %cst_116 = arith.constant dense<0.000000e+00> : vector<8x4xf32>
    %205 = tpu.matmul %204, %185, %cst_116 {dimension_numbers = #tpu.dot_dimension_numbers<[1], [0], [0], [1], [0, 0, 1, 1], [], []>} : vector<8x8xbf16>, vector<8x4xbf16>, vector<8x4xf32> -> vector<8x4xf32>
    %206 = arith.truncf %205 : vector<8x4xf32> to vector<8x4xbf16>
    %c0_117 = arith.constant 0 : index
    %c0_118 = arith.constant 0 : index
    %c24_119 = arith.constant 24 : index
    %207 = vector.load %arg4[%c0_117, %c0_118, %c24_119] : memref<1x8x32xbf16, #tpu.memory_space<vmem>>, vector<1x8x4xbf16>
    %208 = vector.shape_cast %207 : vector<1x8x4xbf16> to vector<8x4xbf16>
    %209 = vector.shape_cast %206 : vector<8x4xbf16> to vector<1x8x4xbf16>
    tpu.vector_store %arg4[%c0_117, %c0_118, %c24_119], %209 {strides = array<i32>} : memref<1x8x32xbf16, #tpu.memory_space<vmem>>, vector<1x8x4xbf16>,
    %c0_120 = arith.constant 0 : index
    %c0_121 = arith.constant 0 : index
    %c28 = arith.constant 28 : index
    %210 = vector.load %arg2[%c0_120, %c0_121, %c28] : memref<1x8x96xbf16, #tpu.memory_space<vmem>>, vector<1x8x4xbf16>
    %211 = vector.shape_cast %210 : vector<1x8x4xbf16> to vector<8x4xbf16>
    %c0_122 = arith.constant 0 : index
    %c0_123 = arith.constant 0 : index
    %c60 = arith.constant 60 : index
    %212 = vector.load %arg3[%c0_122, %c0_123, %c60] : memref<1x8x96xbf16, #tpu.memory_space<vmem>>, vector<1x8x4xbf16>
    %213 = vector.shape_cast %212 : vector<1x8x4xbf16> to vector<8x4xbf16>
    %c0_124 = arith.constant 0 : index
    %c0_125 = arith.constant 0 : index
    %c92 = arith.constant 92 : index
    %214 = vector.load %arg3[%c0_124, %c0_125, %c92] : memref<1x8x96xbf16, #tpu.memory_space<vmem>>, vector<1x8x4xbf16>
    %215 = vector.shape_cast %214 : vector<1x8x4xbf16> to vector<8x4xbf16>
    %216 = arith.extf %211 : vector<8x4xbf16> to vector<8x4xf32>
    %cst_126 = arith.constant 5.000000e-01 : f32
    %217 = vector.broadcast %cst_126 : f32 to vector<8x4xf32>
    %218 = arith.mulf %216, %217 : vector<8x4xf32>
    %219 = arith.truncf %218 : vector<8x4xf32> to vector<8x4xbf16>
    "tpu.trace_start"() <{level = 10 : i32, message = "qd,kd->qk"}> : () -> ()
    %cst_127 = arith.constant dense<0.000000e+00> : vector<8x8xf32>
    %220 = tpu.matmul %219, %213, %cst_127 {dimension_numbers = #tpu.dot_dimension_numbers<[1], [1], [0], [0], [0, 0, 1, 0], [], []>} : vector<8x4xbf16>, vector<8x4xbf16>, vector<8x8xf32> -> vector<8x8xf32>
    "tpu.trace_stop"() : () -> ()
    %cst_128 = arith.constant dense<0xFF800000> : vector<8xf32>
    %221 = vector.multi_reduction <maximumf>, %220, %cst_128 [1] : vector<8x8xf32> to vector<8xf32>
    %222 = vector.shape_cast %221 : vector<8xf32> to vector<8x1xf32>
    %223 = vector.broadcast %222 : vector<8x1xf32> to vector<8x8xf32>
    %224 = arith.subf %220, %223 : vector<8x8xf32>
    %225 = math.exp %224 : vector<8x8xf32>
    %cst_129 = arith.constant dense<0.000000e+00> : vector<8xf32>
    %226 = vector.multi_reduction <add>, %225, %cst_129 [1] : vector<8x8xf32> to vector<8xf32>
    %227 = vector.shape_cast %226 : vector<8xf32> to vector<8x1xf32>
    %228 = tpu.reciprocal %227 : vector<8x1xf32> -> vector<8x1xf32>
    %229 = vector.broadcast %228 : vector<8x1xf32> to vector<8x8xf32>
    %230 = arith.mulf %225, %229 : vector<8x8xf32>
    %c0_130 = arith.constant 0 : index
    %c7 = arith.constant 7 : index
    %c0_131 = arith.constant 0 : index
    %c0_132 = arith.constant 0 : index
    %231 = vector.load %arg5[%c0_130, %c7, %c0_131, %c0_132] : memref<1x8x8x8xf32, #tpu.memory_space<vmem>>, vector<1x1x8x8xf32>
    %232 = vector.shape_cast %231 : vector<1x1x8x8xf32> to vector<8x8xf32>
    %233 = vector.shape_cast %230 : vector<8x8xf32> to vector<1x1x8x8xf32>
    tpu.vector_store %arg5[%c0_130, %c7, %c0_131, %c0_132], %233 {strides = array<i32>} : memref<1x8x8x8xf32, #tpu.memory_space<vmem>>, vector<1x1x8x8xf32>,
    %234 = arith.truncf %230 : vector<8x8xf32> to vector<8x8xbf16>
    %cst_133 = arith.constant dense<0.000000e+00> : vector<8x4xf32>
    %235 = tpu.matmul %234, %215, %cst_133 {dimension_numbers = #tpu.dot_dimension_numbers<[1], [0], [0], [1], [0, 0, 1, 1], [], []>} : vector<8x8xbf16>, vector<8x4xbf16>, vector<8x4xf32> -> vector<8x4xf32>
    %236 = arith.truncf %235 : vector<8x4xf32> to vector<8x4xbf16>
    %c0_134 = arith.constant 0 : index
    %c0_135 = arith.constant 0 : index
    %c28_136 = arith.constant 28 : index
    %237 = vector.load %arg4[%c0_134, %c0_135, %c28_136] : memref<1x8x32xbf16, #tpu.memory_space<vmem>>, vector<1x8x4xbf16>
    %238 = vector.shape_cast %237 : vector<1x8x4xbf16> to vector<8x4xbf16>
    %239 = vector.shape_cast %236 : vector<8x4xbf16> to vector<1x8x4xbf16>
    tpu.vector_store %arg4[%c0_134, %c0_135, %c28_136], %239 {strides = array<i32>} : memref<1x8x32xbf16, #tpu.memory_space<vmem>>, vector<1x8x4xbf16>,
    return
  }
  func.func @transform_0(%arg0: i32, %arg1: i32) -> (i32, i32, i32) {
    %c0_i32 = arith.constant 0 : i32
    %c0_i32_0 = arith.constant 0 : i32
    return %arg0, %arg1, %c0_i32 : i32, i32, i32
  }
  func.func @transform_1(%arg0: i32, %arg1: i32) -> (i32, i32, i32) {
    %c0_i32 = arith.constant 0 : i32
    %c0_i32_0 = arith.constant 0 : i32
    %c0_i32_1 = arith.constant 0 : i32
    return %arg0, %c0_i32, %c0_i32_0 : i32, i32, i32
  }
  func.func @transform_2(%arg0: i32, %arg1: i32) -> (i32, i32, i32) {
    %c0_i32 = arith.constant 0 : i32
    %c0_i32_0 = arith.constant 0 : i32
    return %arg0, %arg1, %c0_i32 : i32, i32, i32
  }
  func.func @transform_3(%arg0: i32, %arg1: i32) -> (i32, i32, i32, i32) {
    %c0_i32 = arith.constant 0 : i32
    %c0_i32_0 = arith.constant 0 : i32
    %c0_i32_1 = arith.constant 0 : i32
    return %arg0, %c0_i32, %arg1, %c0_i32_0 : i32, i32, i32, i32
  }
}

</mosaic_0001>

<bundles_post_ra>
// kernel: attention_forward.3
= control target key start
LH: loop header
LB: loop body
LE: loop exit
PB: predicated region body
PF: predicated region fallthrough
CT: control target
= control target key end

     0   :  { %v119_v0 = vmov 0.0   ;;  %vm120_vm0 = vmmov 0   ;;  %vm35_vm1 = vcmask 261120   ;;  %vm88_vm2 = vcmask 781312   ;;  %s151_s1 = inlined_call_operand.vmem [shape: bf16[32,96], index: 1, kind: input, shape index: {}]   ;;  %s152_s0 = inlined_call_operand.vmem [shape: bf16[16,32], index: 0, kind: input, shape index: {}]   ;;  %s153_s2 = inlined_call_operand.vmem [shape: bf16[16,96], index: 2, kind: output, shape index: {}]  }
   0x1   :  { %106 = vmatprep.subr.bf16.mxu0 %v119_v0  ;;  %v116_v1 = vld [vmem:[%s151_s1 + $0x8] sm:$0xff]   ;;  %110 = vmatprep.mubr.msk.bf16.mxu0 %vm120_vm0, %v119_v0  ;;  %v117_v2 = vld [vmem:[%s151_s1] sm:$0xff]  }
   0x2   :  { %107 = vmatpush3.bf16.msra.mxu0 %v116_v1  ;;  %v118_v3 = vld [vmem:[%s152_s0] sm:$0xff]  }
   0x3   :  { %108 = vmatprep.subr.bf16.mxu0 %v119_v0 }
   0x6   :  { %109 = vmatpush3.bf16.msra.mxu0 %v117_v2 }
   0x9   :  { %111 = vmatmul.mubr.msk.bf16.vlgmr.msra.gmra.mxu0 %vm35_vm1, %v118_v3 }
  0xc9   :  { %v73_v4 = vpop.f32.mrf.mxu0 }
  0xca   :  { %v101_v5 = vpack.c.bf16 %v73_v4, %v73_v4 }
  0xcb   :  { %v112_v6 = vpop.f32.mrf.mxu0 }
  0xcc   :  { %89 = vst.msk [vmem:[%s153_s2] sm:$0xf] %vm88_vm2, %v101_v5 }
  0xcd   :  { %v76_v7 = vpop.f32.mrf.mxu0 }
  0xce   :  { %v102_v8 = vpack.c.bf16 %v76_v7, %v76_v7 }
  0xcf   :  { %v113_v9 = vpop.f32.mrf.mxu0 }
  0xd0   :  { %90 = vst.msk [vmem:[%s153_s2 + $0x4] sm:$0xf] %vm88_vm2, %v102_v8 }

// kernel: attention_forward.5
= control target key start
LH: loop header
LB: loop body
LE: loop exit
PB: predicated region body
PF: predicated region fallthrough
CT: control target
= control target key end

     0   :  { %v155_v1 = vmov 0.0   ;;  %vm156_vm0 = vmmov 0   ;;  %s195_s0 = inlined_call_operand.vmem [shape: bf16[16,32], index: 0, kind: input, shape index: {}]   ;;  %s196_s1 = inlined_call_operand.vmem [shape: bf16[32,32], index: 1, kind: input, shape index: {}]   ;;  %s197_s2 = inlined_call_operand.vmem [shape: f32[1,32], index: 2, kind: input, shape index: {}]   ;;  %s198_s3 = inlined_call_operand.hbm [shape: f32[16,32], index: 3, kind: output, shape index: {}]  }
   0x1   :  { %v130_v0 = vld [vmem:[%s196_s1 + $0x8] sm:$0xff]   ;;  %117 = vmatprep.subr.bf16.mxu0 %v155_v1  ;;  %v131_v2 = vld [vmem:[%s196_s1] sm:$0xff]   ;;  %121 = vmatprep.mubr.msk.bf16.mxu0 %vm156_vm0, %v155_v1 }
   0x2   :  { %118 = vmatpush3.bf16.msra.mxu0 %v130_v0 }
   0x3   :  { %119 = vmatprep.subr.bf16.mxu0 %v155_v1 }
   0x4   :  { %8 = vsyncpa [#allocation3], 0  ;;  %v132_v3 = vld [vmem:[%s195_s0] sm:$0xff]   ;;  %vm46_vm1 = vcmask 261120   ;;  %s157_s20 = smov [#allocation2]  }
   0x5   :  { %v109_v4 = vld [vmem:[%s197_s2] ss:$0 sm:$0xff]  ;;  %s98_s21 = sshll.u32 %s157_s20, 4  ;;  %s99_s21 = int_to_ptr.vmem [resolvable:$true] %s98_s21 }
   0x6   :  { %120 = vmatpush3.bf16.msra.mxu0 %v131_v2  ;;  %s133_s1 = scalar_lea.vmem %s99_s21, 256  ;;  %p138_p1 = scmp.lt.s32.totalorder %s99_s21, %s99_s21 }
   0x7   :  { %p134_p0 = scmp.ne.s32.totalorder %s99_s21, %s133_s1  ;;  %p139_p2 = scmp.lt.s32.totalorder %s133_s1, %s133_s1 }
   0x9   :  { %122 = vmatmul.mubr.msk.bf16.vlgmr.msra.gmra.mxu0 %vm46_vm1, %v132_v3  ;;  %p140_p3 = por %p139_p2, %p138_p1 }
   0xb   :  { %p141_p4 = pnand %p140_p3, %p134_p0 }
  0xc9   :  { %v84_v5 = vpop.f32.mrf.mxu0 }
  0xca   :  { %v85_v6 = vadd.f32 %v109_v4, %v84_v5 }
  0xcb   :  { %v123_v7 = vpop.f32.mrf.mxu0 }
  0xcc   :  { %91 = vst.msk [vmem:[#allocation2] sm:$0xff] %vm46_vm1, %v85_v6 }
  0xcd   :  { %v87_v8 = vpop.f32.mrf.mxu0 }
  0xce   :  { %v88_v9 = vadd.f32 %v109_v4, %v87_v8 }
  0xcf   :  { %v124_v10 = vpop.f32.mrf.mxu0 }
  0xd0   :  { %92 = vst.msk [vmem:[#allocation2 + $0x8] sm:$0xff] %vm46_vm1, %v88_v9 }
  0xd1   :  { %144 = shalt.err (!%p141_p4)
}
  0xd2   :  { %s158_s0 = smov 128   ;;  %s159_s2 = smov 8  }
  0xd3   :  { %104 = dma.vmem_to_hbm [thread:$0]  %s99_s21, 256, %s198_s3, [#allocation3], %s158_s0, %s158_s0, %s159_s2  }
  0xd4   :  { %153 = dma.done.wait [#allocation3], 256  }
  0xd5   :  { %154 = vsyncadd [#allocation3], 4294967040 }
  0xd6   :  { %108 = vsyncpa [#allocation3], 1 }

// kernel: attention_forward.4
= control target key start
LH: loop header
LB: loop body
LE: loop exit
PB: predicated region body
PF: predicated region fallthrough
CT: control target
= control target key end

     0   :  { %9 = vsyncpa [#allocation3], 0  ;;  %s2180_s0 = inlined_call_operand.vmem [shape: bf16[2,8,96], index: 0, kind: input, shape index: {}, may-alias: {0,1}]   ;;  %s2181_s1 = inlined_call_operand.vmem [shape: bf16[2,8,96], index: 1, kind: input, shape index: {}, may-alias: {0,1}]   ;;  %s2182_s2 = inlined_call_operand.vmem [shape: bf16[2,8,32], index: 2, kind: output, shape index: {0}]   ;;  %s2183_s3 = inlined_call_operand.hbm [shape: f32[2,8,8,8], index: 3, kind: output, shape index: {1}]  }
   0x1   :  { %11 = vsyncpa [#allocation3 + $0x1], 0  ;;  %s1852_s12 = smov 0   ;;  %s1854_s13 = smov 0  }
   0x2   :  { %s1856_s14 = smov 0   ;;  %s1858_s15 = smov 0  }
   0x3   :  { %s1860_s16 = smov 0   ;;  %s1862_s17 = smov 0  }
   0x4 LB: > { %s1404_s18 = sadd.s32 4294967295, %s1796_s17   ;;  %s1405_s19 = sadd.s32 4294967294, %s1796_s17   ;;  %s1796_s17 = sphi %s1862_s17, %s17_s17   ;;  %s1792_s16 = sphi %s1860_s16, %s2190_s16   ;;  %s1788_s15 = sphi %s1858_s15, %s2189_s15   ;;  %s1784_s14 = sphi %s1856_s14, %s2188_s14   ;;  %s1780_s13 = sphi %s1854_s13, %s2187_s13   ;;  %s1776_s12 = sphi %s1852_s12, %s2186_s12  }
   0x5   : > { %s29_s20 = sadd.s32 1, %s1792_s16  ;;  %s120_s21 = sadd.s32 1, %s1784_s14 }
   0x6   : > { %p31_p0 = scmp.ge.s32.totalorder %s29_s20, 2  ;;  %p130_p1 = scmp.ne.s32.totalorder %s1784_s14, %s1780_s13 }
   0x7   : > { %p131_p2 = scmp.eq.s32.totalorder %s1404_s18, 1  ;;  %p136_p3 = scmp.ne.s32.totalorder %s1780_s13, %s1776_s12 }
   0x8   : > { %s2192_s20 = smov (%p31_p0, %s29_s20), 0  ;;  %p137_p5 = scmp.eq.s32.totalorder %s1405_s19, 1 }
   0x9   : > { %p1892_p4 = por %p131_p2, %p130_p1  ;;  %s115_s23 = ssub.s32 %s1792_s16, %s2192_s20 }
   0xa   : > { %p1408_p6 = scmp.ge.s32.totalorder %s1796_s17, 1  ;;  %p118_p7 = scmp.eq.s32.totalorder %s115_s23, 0 }
   0xb   : > { %p1899_p8 = por %p137_p5, %p136_p3  ;;  %p172_p9 = scmp.lt.s32.totalorder %s1796_s17, 3 }
   0xc   : > { %s1905_s25 = scalar_select %p118_p7, %s1784_s14, %s120_s21  }
   0xd   : > { %p173_p10 = pnand %p1408_p6, %p172_p9 }
   0xe   : > { %p209_p11 = scmp.lt.s32.totalorder (!%p173_p10), %s1788_s15, 1  ;;  %s1800_s4 = smov (!%p173_p10), 96  }
   0xf   : > { %176 = sbr.rel (%p173_p10) target bundleno = 1582 (0x62e), region = 28  ;;  %s1801_s8 = smov (!%p173_p10), 64  }
  0x10   : > { %s1802_s9 = smov (!%p173_p10), 92   ;;  %s1803_s10 = smov (!%p173_p10), 84  }
  0x11   : > { %s1804_s11 = smov (!%p173_p10), 72   ;;  %s1805_s18 = smov (!%p173_p10), 68  }
  0x12   : > { %s1806_s19 = smov (!%p173_p10), 124   ;;  %s1807_s21 = smov (!%p173_p10), 88  }
  0x13   : > { %s1808_s23 = smov (!%p173_p10), 120   ;;  %s1810_s28 = smov (!%p173_p10), 80  }
  0x14   : > { %v1798_v0 = vmov 0.0   ;;  %vm1799_vm0 = vmmov 0   ;;  %s210_s26 = scalar_select %p209_p11, %s1788_s15, 1  ;;  %vm238_vm1 = vcmask 31744   ;;  %vm285_vm2 = vcmask 64512  }
  0x15   : > { %1496 = vmatprep.subr.bf16.mxu0 %v1798_v0  ;;  %1498 = vmatprep.mubr.msk.bf16.mxu0 %vm1799_vm0, %v1798_v0  ;;  %vm304_vm3 = vcmask 1043456   ;;  %s1811_s29 = smov 112   ;;  %s1813_s5 = smov 108   ;;  %vm349_vm4 = vcmask 27648  }
  0x16   : > { %1502 = vmatprep.subr.bf16.mxu1 %v1798_v0  ;;  %1504 = vmatprep.mubr.msk.bf16.mxu1 %vm1799_vm0, %v1798_v0  ;;  %s1915_s27 = sshll.u32 %s210_s26, 2  ;;  %s1809_s26 = smov 116  }
  0x17   : > { %s1921_s30 = scalar_lea.vmem %s2181_s1, %s1915_s27  ;;  %s1928_s7 = scalar_lea.vmem %s2180_s0, %s1915_s27 }
  0x18   : > { %v1680_v1 = vld [vmem:[%s1921_s30] ss:$0 sps:$4 sm:$0xff]   ;;  %s1814_s6 = smov 104  }
  0x19   : > { %236 = vrot.lane.b32.xlu0 %v1680_v1, %s1800_s4  ;;  %v228_v2 = vld [vmem:[%s1928_s7] sm:$0xf]  ;;  %299 = vrot.lane.b32.xlu1 %v1680_v1, %s1801_s8  ;;  %s1812_s4 = smov 76  }
  0x1a   : > { %v230_v3 = vunpack.c.l.bf16 %v228_v2  ;;  %v1937_v8 = vld [vmem:[%s1921_s30] ss:$0 sps:$4 sm:$0xff]  }
  0x1b   : > { %v1942_v14 = vld [vmem:[%s1921_s30] ss:$0 sps:$4 sm:$0xff]  }
  0x1c   : > { %v231_v6 = vmul.f32 0.5, %v230_v3  ;;  %v1946_v16 = vld [vmem:[%s1921_s30] ss:$0 sps:$4 sm:$0xff]  }
  0x1d   : > { %362 = vrot.lane.b32.xlu1 %v1937_v8, %s1802_s9  ;;  %v1952_v18 = vld [vmem:[%s1921_s30] ss:$0 sps:$4 sm:$0xff]  }
  0x1e   : > { %v232_v7 = vpack.c.bf16 %v231_v6, %v231_v6  ;;  %v351_v24 = vld [vmem:[%s1928_s7] sm:$0xf] }
  0x1f   : > { %v353_v25 = vunpack.c.l.bf16 %v351_v24  ;;  %v481_v27 = vld [vmem:[%s1928_s7] sm:$0xf] }
  0x20   : > { %v483_v29 = vunpack.c.l.bf16 %v481_v27  ;;  %v611_v30 = vld [vmem:[%s1928_s7] sm:$0xf] }
  0x21   : > { %v354_v26 = vmul.f32 0.5, %v353_v25  ;;  %v1960_v31 = vld [vmem:[%s1921_s30] ss:$0 sps:$4 sm:$0xff]   ;;  %v613_v33 = vunpack.c.l.bf16 %v611_v30 }
  0x22   : > { %v484_v32 = vmul.f32 0.5, %v483_v29  ;;  %v741_v36 = vld [vmem:[%s1928_s7] sm:$0xf] }
  0x23   : > { %v355_v28 = vpack.c.bf16 %v354_v26, %v354_v26  ;;  %v614_v35 = vmul.f32 0.5, %v613_v33  ;;  %v743_v38 = vunpack.c.l.bf16 %v741_v36  ;;  %v1965_v39 = vld [vmem:[%s1921_s30] ss:$0 sps:$4 sm:$0xff]  }
  0x24   : > { %v485_v34 = vpack.c.bf16 %v484_v32, %v484_v32  ;;  %v871_v41 = vld [vmem:[%s1928_s7] sm:$0xf] }
  0x25   : > { %v615_v37 = vpack.c.bf16 %v614_v35, %v614_v35  ;;  %v744_v40 = vmul.f32 0.5, %v743_v38  ;;  %v873_v43 = vunpack.c.l.bf16 %v871_v41  ;;  %v1001_v44 = vld [vmem:[%s1928_s7] sm:$0xf] }
  0x26   : > { %v1971_v45 = vld [vmem:[%s1921_s30] ss:$0 sps:$4 sm:$0xff]   ;;  %v1003_v47 = vunpack.c.l.bf16 %v1001_v44  ;;  %s1815_s30 = smov 100  }
  0x27   : > { %v745_v42 = vpack.c.bf16 %v744_v40, %v744_v40  ;;  %v874_v46 = vmul.f32 0.5, %v873_v43  ;;  %v1131_v48 = vld [vmem:[%s1928_s7] sm:$0xf]  ;;  %s206_s7 = sand.u32 1, %s1780_s13  }
  0x28   : > { %v1004_v50 = vmul.f32 0.5, %v1003_v47  ;;  %v1133_v51 = vunpack.c.l.bf16 %v1131_v48  ;;  %s1409_s8 = sshll.u32 %s206_s7, 6 }
  0x29   : > { %v875_v49 = vpack.c.bf16 %v874_v46, %v874_v46  ;;  %s1978_s9 = scalar_lea.vmem [#allocation2], %s1409_s8  ;;  %s1827_s8 = smov 20  }
  0x2a   : > { %v1005_v52 = vpack.c.bf16 %v1004_v50, %v1004_v50  ;;  %v1134_v53 = vmul.f32 0.5, %v1133_v51 }
  0x2c   : > { %v1135_v54 = vpack.c.bf16 %v1134_v53, %v1134_v53 }
  0x8b   : > { %v237_v4 = vpop.permute.xlu0 %236  ;;  %v300_v15 = vpop.permute.xlu1 %299 }
  0x8c   : > { %v243_v5 = vsel %vm238_vm1, %v237_v4, 0  ;;  %v306_v17 = vsel %vm304_vm3, %v300_v15, 0 }
  0x8d   : > { %1497 = vmatpush3.bf16.xpose.msra.mxu0 %v243_v5  ;;  %1503 = vmatpush3.bf16.msra.mxu1 %v306_v17 }
  0x8e   : > { %1514 = vmatprep.subr.bf16.mxu0 %v1798_v0  ;;  %1508 = vmatprep.subr.bf16.mxu1 %v1798_v0 }
  0x8f   : > { %v363_v55 = vpop.permute.xlu1 %362 }
  0x90   : > { %v368_v62 = vsel %vm238_vm1, %v363_v55, 0 }
  0x94   : > { %1499 = vmatmul.mubr.msk.bf16.vlgmr.msra.gmra.mxu0 %vm238_vm1, %v232_v7 }
  0x95   : > { %1516 = vmatprep.mubr.msk.bf16.mxu0 %vm1799_vm0, %v1798_v0 }
 0x154   : > { %v279_v9 = vpop.f32.mrf.mxu0 }
 0x155   : > { %v286_v10 = vsel %vm285_vm2, %v279_v9, -inf }
 0x156   : > { %287 = vmax.xlane.f32.xlu0 %v286_v10  ;;  %v1500_v11 = vpop.f32.mrf.mxu0 }
 0x158   : > { %v282_v12 = vpop.f32.mrf.mxu0 }
 0x15a   : > { %v1501_v13 = vpop.f32.mrf.mxu0 }
 0x16c   : > { %622 = vrot.lane.b32.xlu0 %v1942_v14, %s1803_s10  ;;  %s1463_s10 = sshll.u32 %s1788_s15, 10  ;;  %s1828_s15 = smov [#allocation2]  }
 0x170   : > { %1012 = vrot.lane.b32.xlu0 %v1946_v16, %s1804_s11  ;;  %s1286_s11 = sshll.u32 %s1978_s9, 4  ;;  %s2123_s11 = int_to_ptr.vmem [resolvable:$true] %s1286_s11 }
 0x174   : > { %1142 = vrot.lane.b32.xlu0 %v1952_v18, %s1805_s18  ;;  %s2021_s18 = scalar_lea.vmem %s2182_s2, %s1915_s27  ;;  %s1816_s27 = smov 56  }
 0x1df   : > { %v288_v19 = vpop.xlane.xlu0 %287 }
 0x1e0   : > { %v289_v20 = vsub.f32 %v279_v9, %v288_v19 }
 0x1e2   : > { %v290_v21 = vmul.f32 1.442695, %v289_v20 }
 0x1e3   : > { %v623_v3 = vpop.permute.xlu0 %622 }
 0x1e4   : > { %1688 = vpow2.f32 %v290_v21  ;;  %v628_v4 = vsel %vm238_vm1, %v623_v3, 0 }
 0x1e7   : > { %v1013_v11 = vpop.permute.xlu0 %1012 }
 0x1e8   : > { %v1018_v13 = vsel %vm238_vm1, %v1013_v11, 0 }
 0x1eb   : > { %v1143_v15 = vpop.permute.xlu0 %1142 }
 0x1ec   : > { %v1148_v19 = vsel %vm238_vm1, %v1143_v15, 0 }
 0x1f1   : > { %v1689_v22 = vpop.eup %1688 }
 0x1f2   : > { %v292_v23 = vsel %vm285_vm2, %v1689_v22, 0.0 }
 0x1f3   : > { %293 = vadd.xlane.f32.xlu1 %v292_v23 }
 0x204   : > { %357 = vrot.lane.b32.xlu1 %v355_v28, %s1806_s19  ;;  %s1817_s19 = smov 60  }
 0x208   : > { %492 = vrot.lane.b32.xlu1 %v1960_v31, %s1807_s21  ;;  %s1818_s21 = smov 52  }
 0x20c   : > { %487 = vrot.lane.b32.xlu1 %v485_v34, %s1808_s23  ;;  %s1819_s23 = smov 48  }
 0x210   : > { %617 = vrot.lane.b32.xlu1 %v615_v37, %s1809_s26  ;;  %s1820_s26 = smov 40  }
 0x214   : > { %752 = vrot.lane.b32.xlu1 %v1965_v39, %s1810_s28  ;;  %s1821_s28 = smov 36  }
 0x218   : > { %747 = vrot.lane.b32.xlu1 %v745_v42, %s1811_s29  ;;  %s1822_s29 = smov 44  }
 0x21c   : > { %882 = vrot.lane.b32.xlu1 %v1971_v45, %s1812_s4  ;;  %s1823_s4 = smov 4  }
 0x220   : > { %877 = vrot.lane.b32.xlu1 %v875_v49, %s1813_s5  ;;  %s1824_s5 = smov 8  }
 0x224   : > { %1007 = vrot.lane.b32.xlu1 %v1005_v52, %s1814_s6  ;;  %s1825_s6 = smov 12  }
 0x228   : > { %1137 = vrot.lane.b32.xlu1 %v1135_v54, %s1815_s30  ;;  %s1826_s30 = smov 16  }
 0x27c   : > { %v294_v56 = vpop.xlane.xlu1 %293 }
 0x27d   : > { %1690 = vrcp.f32 %v294_v56 }
 0x280   : > { %v358_v57 = vpop.permute.xlu1 %357 }
 0x284   : > { %v493_v61 = vpop.permute.xlu1 %492 }
 0x285   : > { %v498_v1 = vsel %vm238_vm1, %v493_v61, 0 }
 0x288   : > { %v488_v63 = vpop.permute.xlu1 %487 }
 0x28a   : > { %v1691_v58 = vpop.eup %1690 }
 0x28b   : > { %v296_v59 = vmul.f32 %v1691_v58, %v1689_v22 }
 0x28c   : > { %v618_v2 = vpop.permute.xlu1 %617 }
 0x28d   : > { %297 = vst.msk [vmem:[%s1978_s9] sm:$0xff] %vm285_vm2, %v296_v59  ;;  %v298_v60 = vpack.c.bf16 %v296_v59, %v296_v59 }
 0x28f   : > { %1505 = vmatmul.mubr.msk.bf16.vlgmr.msra.gmra.mxu1 %vm285_vm2, %v298_v60 }
 0x290   : > { %1509 = vmatpush3.bf16.xpose.msra.mxu1 %v368_v62  ;;  %1510 = vmatprep.mubr.msk.bf16.mxu1 %vm1799_vm0, %v1798_v0  ;;  %v753_v5 = vpop.permute.xlu1 %752 }
 0x291   : > { %1520 = vmatprep.subr.bf16.mxu1 %v1798_v0  ;;  %v758_v7 = vsel %vm238_vm1, %v753_v5, 0 }
 0x294   : > { %v748_v6 = vpop.permute.xlu1 %747 }
 0x297   : > { %1511 = vmatmul.mubr.msk.bf16.vlgmr.msra.gmra.mxu1 %vm238_vm1, %v358_v57 }
 0x298   : > { %1521 = vmatpush3.bf16.xpose.msra.mxu1 %v498_v1  ;;  %1522 = vmatprep.mubr.msk.bf16.mxu1 %vm1799_vm0, %v1798_v0  ;;  %v883_v9 = vpop.permute.xlu1 %882 }
 0x299   : > { %1532 = vmatprep.subr.bf16.mxu1 %v1798_v0  ;;  %v888_v10 = vsel %vm238_vm1, %v883_v9, 0 }
 0x29c   : > { %v878_v12 = vpop.permute.xlu1 %877 }
 0x29f   : > { %1523 = vmatmul.mubr.msk.bf16.vlgmr.msra.gmra.mxu1 %vm238_vm1, %v488_v63 }
 0x2a0   : > { %1533 = vmatpush3.bf16.xpose.msra.mxu1 %v628_v4  ;;  %1534 = vmatprep.mubr.msk.bf16.mxu1 %vm1799_vm0, %v1798_v0  ;;  %v1008_v17 = vpop.permute.xlu1 %1007 }
 0x2a1   : > { %1544 = vmatprep.subr.bf16.mxu1 %v1798_v0 }
 0x2a4   : > { %v1138_v20 = vpop.permute.xlu1 %1137 }
 0x2a7   : > { %1535 = vmatmul.mubr.msk.bf16.vlgmr.msra.gmra.mxu1 %vm238_vm1, %v618_v2 }
 0x2a8   : > { %1545 = vmatpush3.bf16.xpose.msra.mxu1 %v758_v7  ;;  %1546 = vmatprep.mubr.msk.bf16.mxu1 %vm1799_vm0, %v1798_v0 }
 0x2a9   : > { %1556 = vmatprep.subr.bf16.mxu1 %v1798_v0 }
 0x2af   : > { %1547 = vmatmul.mubr.msk.bf16.vlgmr.msra.gmra.mxu1 %vm238_vm1, %v748_v6 }
 0x2b0   : > { %1557 = vmatpush3.bf16.xpose.msra.mxu1 %v888_v10  ;;  %1558 = vmatprep.mubr.msk.bf16.mxu1 %vm1799_vm0, %v1798_v0 }
 0x2b1   : > { %1568 = vmatprep.subr.bf16.mxu1 %v1798_v0 }
 0x2b7   : > { %1559 = vmatmul.mubr.msk.bf16.vlgmr.msra.gmra.mxu1 %vm238_vm1, %v878_v12 }
 0x2b8   : > { %1569 = vmatpush3.bf16.xpose.msra.mxu1 %v1018_v13  ;;  %1570 = vmatprep.mubr.msk.bf16.mxu1 %vm1799_vm0, %v1798_v0 }
 0x2b9   : > { %1580 = vmatprep.subr.bf16.mxu1 %v1798_v0 }
 0x2bf   : > { %1571 = vmatmul.mubr.msk.bf16.vlgmr.msra.gmra.mxu1 %vm238_vm1, %v1008_v17 }
 0x2c0   : > { %1581 = vmatpush3.bf16.xpose.msra.mxu1 %v1148_v19  ;;  %1582 = vmatprep.mubr.msk.bf16.mxu1 %vm1799_vm0, %v1798_v0 }
 0x2c7   : > { %1583 = vmatmul.mubr.msk.bf16.vlgmr.msra.gmra.mxu1 %vm238_vm1, %v1138_v20 }
 0x34f   : > { %v342_v21 = vpop.f32.mrf.mxu1 }
 0x350   : > { %v348_v22 = vpack.c.bf16 %v342_v21, %v342_v21 }
 0x351   : > { %v1506_v23 = vpop.f32.mrf.mxu1 }
 0x352   : > { %350 = vst.msk [vmem:[%s2021_s18] sm:$0xf] %vm349_vm4, %v348_v22 }
 0x353   : > { %v345_v24 = vpop.f32.mrf.mxu1 }
 0x355   : > { %v1507_v25 = vpop.f32.mrf.mxu1 }
 0x357   : > { %v404_v26 = vpop.f32.mrf.mxu1 }
 0x358   : > { %v410_v27 = vsel %vm285_vm2, %v404_v26, -inf }
 0x359   : > { %411 = vmax.xlane.f32.xlu0 %v410_v27  ;;  %v1512_v28 = vpop.f32.mrf.mxu1 }
 0x35b   : > { %v407_v29 = vpop.f32.mrf.mxu1 }
 0x35d   : > { %v1513_v30 = vpop.f32.mrf.mxu1 }
 0x35f   : > { %v534_v32 = vpop.f32.mrf.mxu1 }
 0x360   : > { %v540_v33 = vsel %vm285_vm2, %v534_v32, -inf }
 0x361   : > { %541 = vmax.xlane.f32.xlu1 %v540_v33  ;;  %v1524_v34 = vpop.f32.mrf.mxu1 }
 0x363   : > { %v537_v35 = vpop.f32.mrf.mxu1 }
 0x365   : > { %v1525_v36 = vpop.f32.mrf.mxu1 }
 0x367   : > { %v664_v37 = vpop.f32.mrf.mxu1 }
 0x368   : > { %v670_v38 = vsel %vm285_vm2, %v664_v37, -inf }
 0x369   : > { %671 = vmax.xlane.f32.xlu0 %v670_v38  ;;  %v1536_v40 = vpop.f32.mrf.mxu1 }
 0x36b   : > { %v667_v41 = vpop.f32.mrf.mxu1 }
 0x36d   : > { %v1537_v42 = vpop.f32.mrf.mxu1 }
 0x36f   : > { %v794_v43 = vpop.f32.mrf.mxu1 }
 0x370   : > { %v800_v44 = vsel %vm285_vm2, %v794_v43, -inf }
 0x371   : > { %801 = vmax.xlane.f32.xlu0 %v800_v44  ;;  %v1548_v46 = vpop.f32.mrf.mxu1 }
 0x373   : > { %v797_v47 = vpop.f32.mrf.mxu1 }
 0x375   : > { %v1549_v48 = vpop.f32.mrf.mxu1 }
 0x377   : > { %v924_v49 = vpop.f32.mrf.mxu1 }
 0x378   : > { %v930_v50 = vsel %vm285_vm2, %v924_v49, -inf }
 0x379   : > { %931 = vmax.xlane.f32.xlu1 %v930_v50  ;;  %v1560_v51 = vpop.f32.mrf.mxu1 }
 0x37b   : > { %v927_v52 = vpop.f32.mrf.mxu1 }
 0x37d   : > { %v1561_v53 = vpop.f32.mrf.mxu1 }
 0x37f   : > { %v1054_v54 = vpop.f32.mrf.mxu1 }
 0x380   : > { %v1060_v55 = vsel %vm285_vm2, %v1054_v54, -inf }
 0x381   : > { %1061 = vmax.xlane.f32.xlu0 %v1060_v55  ;;  %v1572_v56 = vpop.f32.mrf.mxu1 }
 0x383   : > { %v1057_v57 = vpop.f32.mrf.mxu1 }
 0x385   : > { %v1573_v58 = vpop.f32.mrf.mxu1 }
 0x387   : > { %v1184_v59 = vpop.f32.mrf.mxu1 }
 0x388   : > { %v1190_v63 = vsel %vm285_vm2, %v1184_v59, -inf }
 0x389   : > { %v1584_v60 = vpop.f32.mrf.mxu1 }
 0x38a   : > { %554 = vrot.lane.b32.xlu1 %v1960_v31, %s1816_s27 }
 0x38b   : > { %v1187_v61 = vpop.f32.mrf.mxu1 }
 0x38d   : > { %v1585_v62 = vpop.f32.mrf.mxu1 }
 0x397   : > { %424 = vrot.lane.b32.xlu0 %v1937_v8, %s1817_s19 }
 0x3ae   : > { %1191 = vmax.xlane.f32.xlu1 %v1190_v63 }
 0x3e2   : > { %v412_v1 = vpop.xlane.xlu0 %411 }
 0x3e3   : > { %v413_v2 = vsub.f32 %v404_v26, %v412_v1 }
 0x3e5   : > { %v414_v3 = vmul.f32 1.442695, %v413_v2 }
 0x3e7   : > { %1692 = vpow2.f32 %v414_v3 }
 0x3ea   : > { %v542_v4 = vpop.xlane.xlu1 %541 }
 0x3eb   : > { %v543_v5 = vsub.f32 %v534_v32, %v542_v4 }
 0x3ed   : > { %v544_v6 = vmul.f32 1.442695, %v543_v5 }
 0x3ef   : > { %1694 = vpow2.f32 %v544_v6 }
 0x3f2   : > { %v672_v7 = vpop.xlane.xlu0 %671 }
 0x3f3   : > { %v673_v9 = vsub.f32 %v664_v37, %v672_v7 }
 0x3f4   : > { %v1693_v10 = vpop.eup %1692 }
 0x3f5   : > { %v674_v31 = vmul.f32 1.442695, %v673_v9  ;;  %v416_v11 = vsel %vm285_vm2, %v1693_v10, 0.0 }
 0x3f6   : > { %417 = vadd.xlane.f32.xlu0 %v416_v11 }
 0x3f7   : > { %1696 = vpow2.f32 %v674_v31 }
 0x3fa   : > { %v802_v17 = vpop.xlane.xlu0 %801 }
 0x3fb   : > { %v803_v22 = vsub.f32 %v794_v43, %v802_v17 }
 0x3fc   : > { %v2034_v8 = vpop.eup %1694 }
 0x3fd   : > { %v546_v12 = vsel %vm285_vm2, %v2034_v8, 0.0  ;;  %v804_v24 = vmul.f32 1.442695, %v803_v22 }
 0x3fe   : > { %547 = vadd.xlane.f32.xlu1 %v546_v12 }
 0x3ff   : > { %1698 = vpow2.f32 %v804_v24 }
 0x402   : > { %v932_v23 = vpop.xlane.xlu1 %931 }
 0x403   : > { %v933_v25 = vsub.f32 %v924_v49, %v932_v23 }
 0x404   : > { %v2038_v13 = vpop.eup %1696 }
 0x405   : > { %v676_v15 = vsel %vm285_vm2, %v2038_v13, 0.0  ;;  %v934_v26 = vmul.f32 1.442695, %v933_v25 }
 0x406   : > { %677 = vadd.xlane.f32.xlu0 %v676_v15  ;;  %v555_v32 = vpop.permute.xlu1 %554 }
 0x407   : > { %1700 = vpow2.f32 %v934_v26 }
 0x40a   : > { %v1062_v19 = vpop.xlane.xlu0 %1061 }
 0x40b   : > { %v1063_v27 = vsub.f32 %v1054_v54, %v1062_v19 }
 0x40c   : > { %v2046_v29 = vpop.eup %1698 }
 0x40d   : > { %v1064_v28 = vmul.f32 1.442695, %v1063_v27 }
 0x40e   : > { %v425_v20 = vpop.permute.xlu0 %424 }
 0x40f   : > { %684 = vrot.lane.b32.xlu1 %v1942_v14, %s1818_s21  ;;  %v430_v21 = vsel %vm304_vm3, %v425_v20, 0  ;;  %1702 = vpow2.f32 %v1064_v28  ;;  %v806_v14 = vsel %vm285_vm2, %v2046_v29, 0.0  ;;  %s2121_s21 = scalar_lea.hbm %s2183_s3, %s1463_s10 }
 0x410   : > { %1515 = vmatpush3.bf16.msra.mxu0 %v430_v21 }
 0x411   : > { %1526 = vmatprep.subr.bf16.mxu0 %v1798_v0 }
 0x414   : > { %v2050_v30 = vpop.eup %1700 }
 0x41c   : > { %814 = vrot.lane.b32.xlu0 %v1965_v39, %s1819_s23  ;;  %v936_v39 = vsel %vm285_vm2, %v2050_v30, 0.0  ;;  %v2054_v33 = vpop.eup %1702  ;;  %s2127_s23 = scalar_lea.sflag [#allocation3], %s206_s7 }
 0x41d   : > { %v1066_v37 = vsel %vm285_vm2, %v2054_v33, 0.0 }
 0x433   : > { %807 = vadd.xlane.f32.xlu1 %v806_v14 }
 0x437   : > { %v1192_v34 = vpop.xlane.xlu1 %1191  ;;  %937 = vadd.xlane.f32.xlu1 %v936_v39 }
 0x438   : > { %v1193_v35 = vsub.f32 %v1184_v59, %v1192_v34 }
 0x43a   : > { %v1194_v36 = vmul.f32 1.442695, %v1193_v35 }
 0x43b   : > { %1067 = vadd.xlane.f32.xlu0 %v1066_v37 }
 0x43c   : > { %1704 = vpow2.f32 %v1194_v36 }
 0x449   : > { %v2058_v38 = vpop.eup %1704 }
 0x44a   : > { %v1196_v40 = vsel %vm285_vm2, %v2058_v38, 0.0 }
 0x44b   : > { %1197 = vadd.xlane.f32.xlu1 %v1196_v40 }
 0x451   : > { %1074 = vrot.lane.b32.xlu0 %v1946_v16, %s1820_s26  ;;  %v560_v16 = vsel %vm304_vm3, %v555_v32, 0  ;;  %s1720_s26 = scalar_lea.vmem %s2123_s11, 1024 }
 0x452   : > { %p1721_p12 = scmp.ne.s32.totalorder %s2123_s11, %s1720_s26 }
 0x454   : > { %p1722_p13 = pnand %p1721_p12, %p1892_p4 }
 0x455   : > { %1204 = vrot.lane.b32.xlu0 %v1952_v18, %s1821_s28 }
 0x456   : > { %p1723_p0 = pneg %p1722_p13 }
 0x45c   : > { %944 = vrot.lane.b32.xlu1 %v1971_v45, %s1822_s29 }
 0x47f   : > { %v418_v41 = vpop.xlane.xlu0 %417 }
 0x480   : > { %1706 = vrcp.f32 %v418_v41 }
 0x487   : > { %v548_v42 = vpop.xlane.xlu1 %547 }
 0x488   : > { %1708 = vrcp.f32 %v548_v42 }
 0x48b   : > { %v685_v48 = vpop.permute.xlu1 %684 }
 0x48c   : > { %v690_v50 = vsel %vm304_vm3, %v685_v48, 0 }
 0x48d   : > { %v1707_v43 = vpop.eup %1706 }
 0x48e   : > { %v420_v44 = vmul.f32 %v1707_v43, %v1693_v10 }
 0x48f   : > { %v678_v46 = vpop.xlane.xlu0 %677 }
 0x490   : > { %1710 = vrcp.f32 %v678_v46  ;;  %1418 = vst.msk [vmem:[%s1978_s9 + $0x8] sm:$0xff] %vm285_vm2, %v420_v44  ;;  %v423_v47 = vpack.c.bf16 %v420_v44, %v420_v44 }
 0x492   : > { %1517 = vmatmul.mubr.msk.bf16.vlgmr.msra.gmra.mxu0 %vm285_vm2, %v423_v47 }
 0x493   : > { %1527 = vmatpush3.bf16.msra.mxu0 %v560_v16  ;;  %1528 = vmatprep.mubr.msk.bf16.mxu0 %vm1799_vm0, %v1798_v0  ;;  %v815_v53 = vpop.permute.xlu0 %814 }
 0x494   : > { %1538 = vmatprep.subr.bf16.mxu0 %v1798_v0  ;;  %v820_v55 = vsel %vm304_vm3, %v815_v53, 0 }
 0x495   : > { %v1709_v18 = vpop.eup %1708 }
 0x496   : > { %v550_v45 = vmul.f32 %v1709_v18, %v2034_v8 }
 0x498   : > { %1423 = vst.msk [vmem:[%s1978_s9 + $0x10] sm:$0xff] %vm285_vm2, %v550_v45  ;;  %v553_v49 = vpack.c.bf16 %v550_v45, %v550_v45 }
 0x49a   : > { %1529 = vmatmul.mubr.msk.bf16.vlgmr.msra.gmra.mxu0 %vm285_vm2, %v553_v49 }
 0x49b   : > { %1539 = vmatpush3.bf16.msra.mxu0 %v690_v50  ;;  %1540 = vmatprep.mubr.msk.bf16.mxu0 %vm1799_vm0, %v1798_v0 }
 0x49c   : > { %1550 = vmatprep.subr.bf16.mxu0 %v1798_v0 }
 0x49d   : > { %v1711_v51 = vpop.eup %1710 }
 0x49e   : > { %v680_v52 = vmul.f32 %v1711_v51, %v2038_v13 }
 0x4a0   : > { %1428 = vst.msk [vmem:[%s1978_s9 + $0x18] sm:$0xff] %vm285_vm2, %v680_v52  ;;  %v683_v54 = vpack.c.bf16 %v680_v52, %v680_v52 }
 0x4a2   : > { %1541 = vmatmul.mubr.msk.bf16.vlgmr.msra.gmra.mxu0 %vm285_vm2, %v683_v54 }
 0x4a3   : > { %1551 = vmatpush3.bf16.msra.mxu0 %v820_v55  ;;  %1552 = vmatprep.mubr.msk.bf16.mxu0 %vm1799_vm0, %v1798_v0 }
 0x4a4   : > { %1562 = vmatprep.subr.bf16.mxu0 %v1798_v0 }
 0x4bc   : > { %v808_v56 = vpop.xlane.xlu1 %807 }
 0x4bd   : > { %1712 = vrcp.f32 %v808_v56 }
 0x4c0   : > { %v938_v57 = vpop.xlane.xlu1 %937 }
 0x4c1   : > { %1714 = vrcp.f32 %v938_v57 }
 0x4c4   : > { %v1068_v58 = vpop.xlane.xlu0 %1067 }
 0x4c5   : > { %1716 = vrcp.f32 %v1068_v58 }
 0x4c8   : > { %v1075_v5 = vpop.permute.xlu0 %1074 }
 0x4c9   : > { %v1080_v9 = vsel %vm304_vm3, %v1075_v5, 0 }
 0x4ca   : > { %v1713_v59 = vpop.eup %1712 }
 0x4cb   : > { %v810_v60 = vmul.f32 %v1713_v59, %v2046_v29 }
 0x4cc   : > { %v1205_v10 = vpop.permute.xlu0 %1204 }
 0x4cd   : > { %1433 = vst.msk [vmem:[%s1978_s9 + $0x20] sm:$0xff] %vm285_vm2, %v810_v60  ;;  %v813_v61 = vpack.c.bf16 %v810_v60, %v810_v60  ;;  %v1210_v8 = vsel %vm304_vm3, %v1205_v10, 0 }
 0x4ce   : > { %v1715_v62 = vpop.eup %1714 }
 0x4cf   : > { %1553 = vmatmul.mubr.msk.bf16.vlgmr.msra.gmra.mxu0 %vm285_vm2, %v813_v61  ;;  %v940_v63 = vmul.f32 %v1715_v62, %v2050_v30 }
 0x4d0   : > { %1564 = vmatprep.mubr.msk.bf16.mxu0 %vm1799_vm0, %v1798_v0 }
 0x4d1   : > { %1438 = vst.msk [vmem:[%s1978_s9 + $0x28] sm:$0xff] %vm285_vm2, %v940_v63  ;;  %v943_v7 = vpack.c.bf16 %v940_v63, %v940_v63 }
 0x4d2   : > { %v1717_v1 = vpop.eup %1716 }
 0x4d3   : > { %v1070_v2 = vmul.f32 %v1717_v1, %v2054_v33 }
 0x4d4   : > { %v1198_v3 = vpop.xlane.xlu1 %1197 }
 0x4d5   : > { %1718 = vrcp.f32 %v1198_v3  ;;  %1443 = vst.msk [vmem:[%s1978_s9 + $0x30] sm:$0xff] %vm285_vm2, %v1070_v2  ;;  %v1073_v11 = vpack.c.bf16 %v1070_v2, %v1070_v2 }
 0x4d8   : > { %v945_v4 = vpop.permute.xlu1 %944 }
 0x4d9   : > { %v950_v6 = vsel %vm304_vm3, %v945_v4, 0 }
 0x4da   : > { %1563 = vmatpush3.bf16.msra.mxu0 %v950_v6 }
 0x4db   : > { %1574 = vmatprep.subr.bf16.mxu0 %v1798_v0 }
 0x4dd   : > { %1565 = vmatmul.mubr.msk.bf16.vlgmr.msra.gmra.mxu0 %vm285_vm2, %v943_v7 }
 0x4de   : > { %1575 = vmatpush3.bf16.msra.mxu0 %v1080_v9  ;;  %1576 = vmatprep.mubr.msk.bf16.mxu0 %vm1799_vm0, %v1798_v0 }
 0x4df   : > { %1586 = vmatprep.subr.bf16.mxu0 %v1798_v0 }
 0x4e2   : > { %v1719_v31 = vpop.eup %1718 }
 0x4e3   : > { %v1200_v12 = vmul.f32 %v1719_v31, %v2058_v38 }
 0x4e5   : > { %1577 = vmatmul.mubr.msk.bf16.vlgmr.msra.gmra.mxu0 %vm285_vm2, %v1073_v11  ;;  %1448 = vst.msk [vmem:[%s1978_s9 + $0x38] sm:$0xff] %vm285_vm2, %v1200_v12  ;;  %v1203_v13 = vpack.c.bf16 %v1200_v12, %v1200_v12  ;;  %s1724_s9 = sshll.u32 %s1828_s15, 4  ;;  %s1725_s9 = int_to_ptr.vmem [resolvable:$false] %s1724_s9 }
 0x4e6   : > { %1587 = vmatpush3.bf16.msra.mxu0 %v1210_v8  ;;  %1588 = vmatprep.mubr.msk.bf16.mxu0 %vm1799_vm0, %v1798_v0  ;;  %s1726_s28 = scalar_lea.vmem %s1725_s9, 2048  ;;  %p1727_p1 = scmp.lt.s32.totalorder %s2123_s11, %s1725_s9 }
 0x4e7   : > { %p1728_p2 = scmp.lt.s32.totalorder %s1726_s28, %s1720_s26 }
 0x4e9   : > { %p1729_p3 = por %p1728_p2, %p1727_p1 }
 0x4eb   : > { %p1730_p5 = pnand %p1729_p3, %p1723_p0 }
 0x4ed   : > { %1589 = vmatmul.mubr.msk.bf16.vlgmr.msra.gmra.mxu0 %vm285_vm2, %v1203_v13 }
 0x552   : > { %v466_v15 = vpop.f32.mrf.mxu0 }
 0x553   : > { %v1456_v17 = vpack.c.bf16 %v466_v15, %v466_v15 }
 0x554   : > { %v1518_v19 = vpop.f32.mrf.mxu0 }
 0x555   : > { %476 = vrot.lane.b32.xlu1 %v1456_v17, %s1823_s4 }
 0x556   : > { %v469_v20 = vpop.f32.mrf.mxu0 }
 0x558   : > { %v1519_v21 = vpop.f32.mrf.mxu0 }
 0x55a   : > { %v596_v22 = vpop.f32.mrf.mxu0 }
 0x55b   : > { %v1457_v23 = vpack.c.bf16 %v596_v22, %v596_v22 }
 0x55c   : > { %v1530_v24 = vpop.f32.mrf.mxu0 }
 0x55d   : > { %606 = vrot.lane.b32.xlu0 %v1457_v23, %s1824_s5 }
 0x55e   : > { %v599_v25 = vpop.f32.mrf.mxu0 }
 0x560   : > { %v1531_v26 = vpop.f32.mrf.mxu0 }
 0x562   : > { %v726_v27 = vpop.f32.mrf.mxu0 }
 0x563   : > { %v1458_v0 = vpack.c.bf16 %v726_v27, %v726_v27 }
 0x564   : > { %v1542_v28 = vpop.f32.mrf.mxu0 }
 0x565   : > { %736 = vrot.lane.b32.xlu1 %v1458_v0, %s1825_s6 }
 0x566   : > { %v729_v29 = vpop.f32.mrf.mxu0 }
 0x568   : > { %v1543_v14 = vpop.f32.mrf.mxu0 }
 0x58f   : > { %v856_v30 = vpop.f32.mrf.mxu0 }
 0x590   : > { %v1459_v32 = vpack.c.bf16 %v856_v30, %v856_v30 }
 0x591   : > { %v1554_v39 = vpop.f32.mrf.mxu0 }
 0x592   : > { %866 = vrot.lane.b32.xlu0 %v1459_v32, %s1826_s30 }
 0x593   : > { %v859_v33 = vpop.f32.mrf.mxu0 }
 0x595   : > { %v1555_v34 = vpop.f32.mrf.mxu0 }
 0x59d   : > { %v986_v35 = vpop.f32.mrf.mxu0 }
 0x59e   : > { %v1460_v36 = vpack.c.bf16 %v986_v35, %v986_v35 }
 0x59f   : > { %v1566_v37 = vpop.f32.mrf.mxu0 }
 0x5a0   : > { %996 = vrot.lane.b32.xlu1 %v1460_v36, %s1827_s8 }
 0x5a1   : > { %v989_v38 = vpop.f32.mrf.mxu0 }
 0x5a3   : > { %v1567_v40 = vpop.f32.mrf.mxu0 }
 0x5a5   : > { %v1116_v41 = vpop.f32.mrf.mxu0 }
 0x5a6   : > { %1733 = shalt.err (!%p1730_p5)
}
 0x5a7   : > { %s1734_s7 = scalar_lea.hbm %s2121_s21, 1024  ;;  %s1738_s6 = scalar_lea.hbm %s2183_s3, 2048 }
 0x5a8   : > { %p1735_p6 = scmp.ne.s32.totalorder %s2121_s21, %s1734_s7  ;;  %p1739_p10 = scmp.lt.s32.totalorder %s2121_s21, %s2183_s3 }
 0x5a9   : > { %p1740_p11 = scmp.lt.s32.totalorder %s1738_s6, %s1734_s7 }
 0x5aa   : > { %p1736_p7 = pnand %p1735_p6, %p1892_p4 }
 0x5ab   : > { %p1741_p12 = por %p1740_p11, %p1739_p10 }
 0x5ac   : > { %p1737_p9 = pneg %p1736_p7 }
 0x5ae   : > { %p1742_p13 = pnand %p1741_p12, %p1737_p9 }
 0x5b0   : > { %1745 = shalt.err (!%p1742_p13)
}
 0x5b1   : > { %s1829_s10 = smov 128   ;;  %v1461_v42 = vpack.c.bf16 %v1116_v41, %v1116_v41  ;;  %v1578_v43 = vpop.f32.mrf.mxu0  ;;  %s1830_s27 = smov 24   ;;  %vm479_vm5 = vcmask 60448   ;;  %vm609_vm6 = vcmask 93248   ;;  %vm739_vm7 = vcmask 126048  }
 0x5b2   : > { %1592 = dma.vmem_to_hbm [thread:$0]  (%p1892_p4), %s2123_s11, 1024, %s2121_s21, %s2127_s23, %s1829_s10, %s1829_s10, %s1824_s5   ;;  %vm869_vm8 = vcmask 158848   ;;  %vm999_vm9 = vcmask 191648   ;;  %vm1129_vm10 = vcmask 224448   ;;  %vm1259_vm11 = vcmask 257248  }
 0x5b3   : > { %1126 = vrot.lane.b32.xlu0 %v1461_v42, %s1830_s27  ;;  %v1119_v44 = vpop.f32.mrf.mxu0  ;;  %s1831_s19 = smov 28  }
 0x5b5   : > { %v1579_v46 = vpop.f32.mrf.mxu0 }
 0x5b7   : > { %v1246_v47 = vpop.f32.mrf.mxu0 }
 0x5b8   : > { %v1462_v16 = vpack.c.bf16 %v1246_v47, %v1246_v47 }
 0x5b9   : > { %v1590_v18 = vpop.f32.mrf.mxu0 }
 0x5ba   : > { %1256 = vrot.lane.b32.xlu1 %v1462_v16, %s1831_s19 }
 0x5bb   : > { %v1249_v45 = vpop.f32.mrf.mxu0 }
 0x5bd   : > { %v1591_v48 = vpop.f32.mrf.mxu0 }
 0x5c7   : > { %v477_v49 = vpop.permute.xlu1 %476 }
 0x5c8   : > { %480 = vst.msk [vmem:[%s2021_s18] sm:$0xf] %vm479_vm5, %v477_v49 }
 0x5cf   : > { %v607_v50 = vpop.permute.xlu0 %606 }
 0x5d0   : > { %610 = vst.msk [vmem:[%s2021_s18] sm:$0xf] %vm609_vm6, %v607_v50 }
 0x5d7   : > { %v737_v51 = vpop.permute.xlu1 %736 }
 0x5d8   : > { %740 = vst.msk [vmem:[%s2021_s18] sm:$0xf] %vm739_vm7, %v737_v51 }
 0x604   : > { %v867_v52 = vpop.permute.xlu0 %866 }
 0x605   : > { %870 = vst.msk [vmem:[%s2021_s18] sm:$0xf] %vm869_vm8, %v867_v52 }
 0x612   : > { %v997_v53 = vpop.permute.xlu1 %996 }
 0x613   : > { %1000 = vst.msk [vmem:[%s2021_s18] sm:$0xf] %vm999_vm9, %v997_v53 }
 0x625   : > { %v1127_v54 = vpop.permute.xlu0 %1126 }
 0x626   : > { %1130 = vst.msk [vmem:[%s2021_s18] sm:$0xf] %vm1129_vm10, %v1127_v54 }
 0x62c   : > { %v1257_v55 = vpop.permute.xlu1 %1256 }
 0x62d   : > { %1260 = vst.msk [vmem:[%s2021_s18] sm:$0xf] %vm1259_vm11, %v1257_v55 }
 0x62e PF: > { %p1598_p4 = scmp.ge.s32.totalorder %s1796_s17, 2  ;;  %s1311_s22 = sand.u32 1, %s1776_s12  }
 0x62f   : > { %s1312_s5 = scalar_lea.sflag [#allocation3], %s1311_s22 }
 0x630   : > { %p1595_p0 = pnand %p1598_p4, %p1899_p8 }
 0x632   : > { %p1596_p1 = pneg %p1595_p0 }
 0x634   : > { %1771 = dma.done.wait (%p1596_p1), %s1312_s5, 1024  }
 0x635   : > { %1773 = vsyncadd (%p1596_p1), %s1312_s5, 4294966272  ;;  %s17_s17 = sadd.s32 1, %s1796_s17   ;;  %s2186_s12 = smov %s1780_s13 }
 0x636   : > { %p14_p2 = scmp.ge.s32.totalorder %s17_s17, 4   ;;  %s2187_s13 = smov %s1784_s14 }
 0x637   : > { %s2188_s14 = smov %s1905_s25  ;;  %s2189_s15 = smov %s1792_s16 }
 0x638   : > { %s2190_s16 = smov %s2192_s20  ;;  %16 = sbr.rel (!%p14_p2) target bundleno = 4 (0x4), region = 85 }
 0x63d   :  { %1317 = vsyncpa [#allocation3], 1 }
 0x63e   :  { %1319 = vsyncpa [#allocation3 + $0x1], 1 }

</bundles_post_ra>
